<compile_context>
chip_gen: v7x
topology: tpu7x:2x2x1
jax: 0.10.0
libtpu: 0.0.40
codegen_flags: <defaults>
</compile_context>

<pallas_src>
import jax
import jax.numpy as jnp
from jax.experimental import pallas as pl
from jax.experimental.pallas import tpu as pltpu


def _round_up(x, m):
    return ((x + m - 1) // m) * m


def _pad2(a, rows, cols):
    r, c = a.shape
    return jnp.pad(a, ((0, rows - r), (0, cols - c)))


def _ae_kernel(x_ref,
               w1, b1, w2, b2, w3, b3, w4, b4,      # encoder
               w5, b5, w6, b6, w7, b7, w8, b8,      # decoder
               enc_ref, dec_ref):
    def layer(h, w_ref, b_ref):
        # MXU matmul (operands may be bf16), f32 accumulate, f32 bias + sigmoid.
        y = jnp.dot(h.astype(w_ref.dtype), w_ref[...],
                    preferred_element_type=jnp.float32) + b_ref[...]
        return jax.nn.sigmoid(y)

    h = x_ref[...].astype(jnp.float32)
    # encoder
    h = layer(h, w1, b1)
    h = layer(h, w2, b2)
    h = layer(h, w3, b3)
    h = layer(h, w4, b4)
    enc_ref[...] = h.astype(enc_ref.dtype)   # lane-dense (padded to 128)
    # decoder
    d = layer(h, w5, b5)
    d = layer(d, w6, b6)
    d = layer(d, w7, b7)
    d = layer(d, w8, b8)
    dec_ref[...] = d.astype(dec_ref.dtype)   # lane-dense (padded to 128)


def autoencoder_forward(x, params, *, tile_b=512, use_bf16=False):
    """params: list of 8 (W, b) tuples with W already [in, out], b [1, out] or [out].

    Returns (encoded, decoded) with shapes (B, h4) and (B, F)."""
    B, F = x.shape
    dims_in = [w.shape[0] for (w, _) in params]
    dims_out = [w.shape[1] for (w, _) in params]
    h4 = dims_out[3]
    assert dims_in[0] == F and dims_out[-1] == F

    # Lane-pad every layer width up to a multiple of 128 (min 128).
    p_in = [max(128, _round_up(d, 128)) for d in dims_in]
    p_out = [max(128, _round_up(d, 128)) for d in dims_out]
    Fp = p_in[0]
    H4p = p_out[3]

    # Batch tiling: multiple of 8 sublanes, <= tile_b, pad B up to a multiple.
    tile_b = max(8, min(tile_b, _round_up(B, 8)))
    Bp = _round_up(B, tile_b)

    x_p = jnp.pad(x.astype(jnp.float32), ((0, Bp - B), (0, Fp - F)))

    w_dtype = jnp.bfloat16 if use_bf16 else jnp.float32
    flat = []
    for li, (w, b) in enumerate(params):
        wp = _pad2(w.astype(jnp.float32), p_in[li], p_out[li]).astype(w_dtype)
        bp = _pad2(b.astype(jnp.float32).reshape(1, -1), 1, p_out[li])
        flat.extend([wp, bp])

    grid = (Bp // tile_b,)

    x_spec = pl.BlockSpec((tile_b, Fp), lambda i: (i, 0))
    param_specs = []
    for li in range(8):
        # Constant index_map: weights/biases stay VMEM-resident across the grid.
        param_specs.append(pl.BlockSpec((p_in[li], p_out[li]), lambda i: (0, 0)))
        param_specs.append(pl.BlockSpec((1, p_out[li]), lambda i: (0, 0)))
    enc_spec = pl.BlockSpec((tile_b, H4p), lambda i: (i, 0))
    dec_spec = pl.BlockSpec((tile_b, Fp), lambda i: (i, 0))

    flops = 2 * Bp * sum(pi * po for pi, po in zip(p_in, p_out))
    transcendentals = Bp * sum(p_out)
    bytes_accessed = (x_p.size * 4 + Bp * H4p * 4 + Bp * Fp * 4
                      + sum(int(a.size) * a.dtype.itemsize for a in flat))

    enc_p, dec_p = pl.pallas_call(
        _ae_kernel,
        grid=grid,
        out_shape=(
            jax.ShapeDtypeStruct((Bp, H4p), jnp.float32),   # encoded (padded)
            jax.ShapeDtypeStruct((Bp, Fp), jnp.float32),    # decoded (padded)
        ),
        in_specs=[x_spec] + param_specs,
        out_specs=(enc_spec, dec_spec),
        compiler_params=pltpu.CompilerParams(
            dimension_semantics=("parallel",)),              # megacore on v7x
        cost_estimate=pl.CostEstimate(
            flops=flops,
            transcendentals=transcendentals,
            bytes_accessed=bytes_accessed),
    )(x_p, *flat)

    # Slice padded lanes / padded batch rows back off in the wrapper.
    return enc_p[:B, :h4], dec_p[:B, :F]


def init_params(key, dims):
    """dims = [num_input, h1, h2, h3, h4, h3, h2, h1, num_input].
    PyTorch nn.Linear default init: U(-1/sqrt(fan_in), 1/sqrt(fan_in))."""
    params = []
    for i in range(len(dims) - 1):
        fan_in, fan_out = dims[i], dims[i + 1]
        key, kw, kb = jax.random.split(key, 3)
        bound = 1.0 / jnp.sqrt(fan_in)
        w = jax.random.uniform(kw, (fan_in, fan_out), jnp.float32, -bound, bound)
        b = jax.random.uniform(kb, (1, fan_out), jnp.float32, -bound, bound)
        params.append((w, b))
    return params


def _reference_forward(x, params):
    h = x
    outs = []
    for i, (w, b) in enumerate(params):
        h = jax.nn.sigmoid(h @ w + b)
        if i == 3:
            outs.append(h)   # encoded
    outs.append(h)           # decoded
    return tuple(outs)


if __name__ == "__main__":
    # Small deterministic example: Autoencoder(num_input=32, h1=32, h2=16, h3=16, h4=8)
    # batch=30 (matches the PyTorch script's batch_size and exercises the
    # non-multiple-of-tile batch padding path).
    num_input, h1, h2, h3, h4 = 32, 32, 16, 16, 8
    batch = 30

    key = jax.random.PRNGKey(0)
    key, kx = jax.random.split(key)
    x = jax.random.normal(kx, (batch, num_input), jnp.float32)

    dims = [num_input, h1, h2, h3, h4, h3, h2, h1, num_input]
    params = init_params(key, dims)

    encoded, decoded = autoencoder_forward(x, params)   # f32 path (bit-faithful)
    encoded, decoded = jax.block_until_ready((encoded, decoded))

    # Sanity check against a plain-JAX reference.
    enc_ref, dec_ref = _reference_forward(x, params)
    assert encoded.shape == (batch, h4)
    assert decoded.shape == (batch, num_input)
    assert jnp.allclose(encoded, enc_ref, atol=1e-5, rtol=1e-5)
    assert jnp.allclose(decoded, dec_ref, atol=1e-5, rtol=1e-5)

    print("KERNEL_OK")
</pallas_src>

<mosaic_0001>
module attributes {stable_mosaic.version = 11 : i64} {
  func.func @_ae_kernel(%arg0: i32, %arg1: memref<32x128xf32, #tpu.memory_space<vmem>>, %arg2: memref<128x128xf32, #tpu.memory_space<vmem>>, %arg3: memref<1x128xf32, #tpu.memory_space<vmem>>, %arg4: memref<128x128xf32, #tpu.memory_space<vmem>>, %arg5: memref<1x128xf32, #tpu.memory_space<vmem>>, %arg6: memref<128x128xf32, #tpu.memory_space<vmem>>, %arg7: memref<1x128xf32, #tpu.memory_space<vmem>>, %arg8: memref<128x128xf32, #tpu.memory_space<vmem>>, %arg9: memref<1x128xf32, #tpu.memory_space<vmem>>, %arg10: memref<128x128xf32, #tpu.memory_space<vmem>>, %arg11: memref<1x128xf32, #tpu.memory_space<vmem>>, %arg12: memref<128x128xf32, #tpu.memory_space<vmem>>, %arg13: memref<1x128xf32, #tpu.memory_space<vmem>>, %arg14: memref<128x128xf32, #tpu.memory_space<vmem>>, %arg15: memref<1x128xf32, #tpu.memory_space<vmem>>, %arg16: memref<128x128xf32, #tpu.memory_space<vmem>>, %arg17: memref<1x128xf32, #tpu.memory_space<vmem>>, %arg18: memref<32x128xf32, #tpu.memory_space<vmem>>, %arg19: memref<32x128xf32, #tpu.memory_space<vmem>>) attributes {dimension_semantics = [#tpu.dimension_semantics<parallel>], iteration_bounds = array<i64: 1>, scalar_prefetch = 0 : i64, scratch_operands = 0 : i64, tpu.core_type = #tpu.core_type<tc>, window_params = [{transform_indices = @transform_0, window_bounds = array<i64: 32, 128>}, {pipeline_mode = #tpu.pipeline_mode<synchronous>, transform_indices = @transform_1, window_bounds = array<i64: 128, 128>}, {pipeline_mode = #tpu.pipeline_mode<synchronous>, transform_indices = @transform_2, window_bounds = array<i64: 1, 128>}, {pipeline_mode = #tpu.pipeline_mode<synchronous>, transform_indices = @transform_3, window_bounds = array<i64: 128, 128>}, {pipeline_mode = #tpu.pipeline_mode<synchronous>, transform_indices = @transform_4, window_bounds = array<i64: 1, 128>}, {pipeline_mode = #tpu.pipeline_mode<synchronous>, transform_indices = @transform_5, window_bounds = array<i64: 128, 128>}, {pipeline_mode = #tpu.pipeline_mode<synchronous>, transform_indices = @transform_6, window_bounds = array<i64: 1, 128>}, {pipeline_mode = #tpu.pipeline_mode<synchronous>, transform_indices = @transform_7, window_bounds = array<i64: 128, 128>}, {pipeline_mode = #tpu.pipeline_mode<synchronous>, transform_indices = @transform_8, window_bounds = array<i64: 1, 128>}, {pipeline_mode = #tpu.pipeline_mode<synchronous>, transform_indices = @transform_9, window_bounds = array<i64: 128, 128>}, {pipeline_mode = #tpu.pipeline_mode<synchronous>, transform_indices = @transform_10, window_bounds = array<i64: 1, 128>}, {pipeline_mode = #tpu.pipeline_mode<synchronous>, transform_indices = @transform_11, window_bounds = array<i64: 128, 128>}, {pipeline_mode = #tpu.pipeline_mode<synchronous>, transform_indices = @transform_12, window_bounds = array<i64: 1, 128>}, {pipeline_mode = #tpu.pipeline_mode<synchronous>, transform_indices = @transform_13, window_bounds = array<i64: 128, 128>}, {pipeline_mode = #tpu.pipeline_mode<synchronous>, transform_indices = @transform_14, window_bounds = array<i64: 1, 128>}, {pipeline_mode = #tpu.pipeline_mode<synchronous>, transform_indices = @transform_15, window_bounds = array<i64: 128, 128>}, {pipeline_mode = #tpu.pipeline_mode<synchronous>, transform_indices = @transform_16, window_bounds = array<i64: 1, 128>}, {transform_indices = @transform_17, window_bounds = array<i64: 32, 128>}, {transform_indices = @transform_18, window_bounds = array<i64: 32, 128>}]} {
    %c0 = arith.constant 0 : index
    %c0_0 = arith.constant 0 : index
    %0 = vector.load %arg1[%c0, %c0_0] : memref<32x128xf32, #tpu.memory_space<vmem>>, vector<32x128xf32>
    %c0_1 = arith.constant 0 : index
    %c0_2 = arith.constant 0 : index
    %1 = vector.load %arg2[%c0_1, %c0_2] : memref<128x128xf32, #tpu.memory_space<vmem>>, vector<128x128xf32>
    %cst = arith.constant dense<0.000000e+00> : vector<32x128xf32>
    %2 = tpu.matmul %0, %1, %cst {dimension_numbers = #tpu.dot_dimension_numbers<[1], [0], [0], [1], [0, 0, 1, 1], [], []>} : vector<32x128xf32>, vector<128x128xf32>, vector<32x128xf32> -> vector<32x128xf32>
    %c0_3 = arith.constant 0 : index
    %c0_4 = arith.constant 0 : index
    %3 = vector.load %arg3[%c0_3, %c0_4] : memref<1x128xf32, #tpu.memory_space<vmem>>, vector<1x128xf32>
    %4 = vector.broadcast %3 : vector<1x128xf32> to vector<32x128xf32>
    %5 = arith.addf %2, %4 : vector<32x128xf32>
    %6 = arith.negf %5 : vector<32x128xf32>
    %7 = math.exp %6 : vector<32x128xf32>
    %cst_5 = arith.constant 1.000000e+00 : f32
    %8 = vector.broadcast %cst_5 : f32 to vector<32x128xf32>
    %9 = arith.addf %8, %7 : vector<32x128xf32>
    %10 = arith.divf %8, %9 : vector<32x128xf32>
    %c0_6 = arith.constant 0 : index
    %c0_7 = arith.constant 0 : index
    %11 = vector.load %arg4[%c0_6, %c0_7] : memref<128x128xf32, #tpu.memory_space<vmem>>, vector<128x128xf32>
    %cst_8 = arith.constant dense<0.000000e+00> : vector<32x128xf32>
    %12 = tpu.matmul %10, %11, %cst_8 {dimension_numbers = #tpu.dot_dimension_numbers<[1], [0], [0], [1], [0, 0, 1, 1], [], []>} : vector<32x128xf32>, vector<128x128xf32>, vector<32x128xf32> -> vector<32x128xf32>
    %c0_9 = arith.constant 0 : index
    %c0_10 = arith.constant 0 : index
    %13 = vector.load %arg5[%c0_9, %c0_10] : memref<1x128xf32, #tpu.memory_space<vmem>>, vector<1x128xf32>
    %14 = vector.broadcast %13 : vector<1x128xf32> to vector<32x128xf32>
    %15 = arith.addf %12, %14 : vector<32x128xf32>
    %16 = arith.negf %15 : vector<32x128xf32>
    %17 = math.exp %16 : vector<32x128xf32>
    %cst_11 = arith.constant 1.000000e+00 : f32
    %18 = vector.broadcast %cst_11 : f32 to vector<32x128xf32>
    %19 = arith.addf %18, %17 : vector<32x128xf32>
    %20 = arith.divf %18, %19 : vector<32x128xf32>
    %c0_12 = arith.constant 0 : index
    %c0_13 = arith.constant 0 : index
    %21 = vector.load %arg6[%c0_12, %c0_13] : memref<128x128xf32, #tpu.memory_space<vmem>>, vector<128x128xf32>
    %cst_14 = arith.constant dense<0.000000e+00> : vector<32x128xf32>
    %22 = tpu.matmul %20, %21, %cst_14 {dimension_numbers = #tpu.dot_dimension_numbers<[1], [0], [0], [1], [0, 0, 1, 1], [], []>} : vector<32x128xf32>, vector<128x128xf32>, vector<32x128xf32> -> vector<32x128xf32>
    %c0_15 = arith.constant 0 : index
    %c0_16 = arith.constant 0 : index
    %23 = vector.load %arg7[%c0_15, %c0_16] : memref<1x128xf32, #tpu.memory_space<vmem>>, vector<1x128xf32>
    %24 = vector.broadcast %23 : vector<1x128xf32> to vector<32x128xf32>
    %25 = arith.addf %22, %24 : vector<32x128xf32>
    %26 = arith.negf %25 : vector<32x128xf32>
    %27 = math.exp %26 : vector<32x128xf32>
    %cst_17 = arith.constant 1.000000e+00 : f32
    %28 = vector.broadcast %cst_17 : f32 to vector<32x128xf32>
    %29 = arith.addf %28, %27 : vector<32x128xf32>
    %30 = arith.divf %28, %29 : vector<32x128xf32>
    %c0_18 = arith.constant 0 : index
    %c0_19 = arith.constant 0 : index
    %31 = vector.load %arg8[%c0_18, %c0_19] : memref<128x128xf32, #tpu.memory_space<vmem>>, vector<128x128xf32>
    %cst_20 = arith.constant dense<0.000000e+00> : vector<32x128xf32>
    %32 = tpu.matmul %30, %31, %cst_20 {dimension_numbers = #tpu.dot_dimension_numbers<[1], [0], [0], [1], [0, 0, 1, 1], [], []>} : vector<32x128xf32>, vector<128x128xf32>, vector<32x128xf32> -> vector<32x128xf32>
    %c0_21 = arith.constant 0 : index
    %c0_22 = arith.constant 0 : index
    %33 = vector.load %arg9[%c0_21, %c0_22] : memref<1x128xf32, #tpu.memory_space<vmem>>, vector<1x128xf32>
    %34 = vector.broadcast %33 : vector<1x128xf32> to vector<32x128xf32>
    %35 = arith.addf %32, %34 : vector<32x128xf32>
    %36 = arith.negf %35 : vector<32x128xf32>
    %37 = math.exp %36 : vector<32x128xf32>
    %cst_23 = arith.constant 1.000000e+00 : f32
    %38 = vector.broadcast %cst_23 : f32 to vector<32x128xf32>
    %39 = arith.addf %38, %37 : vector<32x128xf32>
    %40 = arith.divf %38, %39 : vector<32x128xf32>
    %c0_24 = arith.constant 0 : index
    %c0_25 = arith.constant 0 : index
    %41 = vector.load %arg18[%c0_24, %c0_25] : memref<32x128xf32, #tpu.memory_space<vmem>>, vector<32x128xf32>
    tpu.vector_store %arg18[%c0_24, %c0_25], %40 {strides = array<i32>} : memref<32x128xf32, #tpu.memory_space<vmem>>, vector<32x128xf32>,
    %c0_26 = arith.constant 0 : index
    %c0_27 = arith.constant 0 : index
    %42 = vector.load %arg10[%c0_26, %c0_27] : memref<128x128xf32, #tpu.memory_space<vmem>>, vector<128x128xf32>
    %cst_28 = arith.constant dense<0.000000e+00> : vector<32x128xf32>
    %43 = tpu.matmul %40, %42, %cst_28 {dimension_numbers = #tpu.dot_dimension_numbers<[1], [0], [0], [1], [0, 0, 1, 1], [], []>} : vector<32x128xf32>, vector<128x128xf32>, vector<32x128xf32> -> vector<32x128xf32>
    %c0_29 = arith.constant 0 : index
    %c0_30 = arith.constant 0 : index
    %44 = vector.load %arg11[%c0_29, %c0_30] : memref<1x128xf32, #tpu.memory_space<vmem>>, vector<1x128xf32>
    %45 = vector.broadcast %44 : vector<1x128xf32> to vector<32x128xf32>
    %46 = arith.addf %43, %45 : vector<32x128xf32>
    %47 = arith.negf %46 : vector<32x128xf32>
    %48 = math.exp %47 : vector<32x128xf32>
    %cst_31 = arith.constant 1.000000e+00 : f32
    %49 = vector.broadcast %cst_31 : f32 to vector<32x128xf32>
    %50 = arith.addf %49, %48 : vector<32x128xf32>
    %51 = arith.divf %49, %50 : vector<32x128xf32>
    %c0_32 = arith.constant 0 : index
    %c0_33 = arith.constant 0 : index
    %52 = vector.load %arg12[%c0_32, %c0_33] : memref<128x128xf32, #tpu.memory_space<vmem>>, vector<128x128xf32>
    %cst_34 = arith.constant dense<0.000000e+00> : vector<32x128xf32>
    %53 = tpu.matmul %51, %52, %cst_34 {dimension_numbers = #tpu.dot_dimension_numbers<[1], [0], [0], [1], [0, 0, 1, 1], [], []>} : vector<32x128xf32>, vector<128x128xf32>, vector<32x128xf32> -> vector<32x128xf32>
    %c0_35 = arith.constant 0 : index
    %c0_36 = arith.constant 0 : index
    %54 = vector.load %arg13[%c0_35, %c0_36] : memref<1x128xf32, #tpu.memory_space<vmem>>, vector<1x128xf32>
    %55 = vector.broadcast %54 : vector<1x128xf32> to vector<32x128xf32>
    %56 = arith.addf %53, %55 : vector<32x128xf32>
    %57 = arith.negf %56 : vector<32x128xf32>
    %58 = math.exp %57 : vector<32x128xf32>
    %cst_37 = arith.constant 1.000000e+00 : f32
    %59 = vector.broadcast %cst_37 : f32 to vector<32x128xf32>
    %60 = arith.addf %59, %58 : vector<32x128xf32>
    %61 = arith.divf %59, %60 : vector<32x128xf32>
    %c0_38 = arith.constant 0 : index
    %c0_39 = arith.constant 0 : index
    %62 = vector.load %arg14[%c0_38, %c0_39] : memref<128x128xf32, #tpu.memory_space<vmem>>, vector<128x128xf32>
    %cst_40 = arith.constant dense<0.000000e+00> : vector<32x128xf32>
    %63 = tpu.matmul %61, %62, %cst_40 {dimension_numbers = #tpu.dot_dimension_numbers<[1], [0], [0], [1], [0, 0, 1, 1], [], []>} : vector<32x128xf32>, vector<128x128xf32>, vector<32x128xf32> -> vector<32x128xf32>
    %c0_41 = arith.constant 0 : index
    %c0_42 = arith.constant 0 : index
    %64 = vector.load %arg15[%c0_41, %c0_42] : memref<1x128xf32, #tpu.memory_space<vmem>>, vector<1x128xf32>
    %65 = vector.broadcast %64 : vector<1x128xf32> to vector<32x128xf32>
    %66 = arith.addf %63, %65 : vector<32x128xf32>
    %67 = arith.negf %66 : vector<32x128xf32>
    %68 = math.exp %67 : vector<32x128xf32>
    %cst_43 = arith.constant 1.000000e+00 : f32
    %69 = vector.broadcast %cst_43 : f32 to vector<32x128xf32>
    %70 = arith.addf %69, %68 : vector<32x128xf32>
    %71 = arith.divf %69, %70 : vector<32x128xf32>
    %c0_44 = arith.constant 0 : index
    %c0_45 = arith.constant 0 : index
    %72 = vector.load %arg16[%c0_44, %c0_45] : memref<128x128xf32, #tpu.memory_space<vmem>>, vector<128x128xf32>
    %cst_46 = arith.constant dense<0.000000e+00> : vector<32x128xf32>
    %73 = tpu.matmul %71, %72, %cst_46 {dimension_numbers = #tpu.dot_dimension_numbers<[1], [0], [0], [1], [0, 0, 1, 1], [], []>} : vector<32x128xf32>, vector<128x128xf32>, vector<32x128xf32> -> vector<32x128xf32>
    %c0_47 = arith.constant 0 : index
    %c0_48 = arith.constant 0 : index
    %74 = vector.load %arg17[%c0_47, %c0_48] : memref<1x128xf32, #tpu.memory_space<vmem>>, vector<1x128xf32>
    %75 = vector.broadcast %74 : vector<1x128xf32> to vector<32x128xf32>
    %76 = arith.addf %73, %75 : vector<32x128xf32>
    %77 = arith.negf %76 : vector<32x128xf32>
    %78 = math.exp %77 : vector<32x128xf32>
    %cst_49 = arith.constant 1.000000e+00 : f32
    %79 = vector.broadcast %cst_49 : f32 to vector<32x128xf32>
    %80 = arith.addf %79, %78 : vector<32x128xf32>
    %81 = arith.divf %79, %80 : vector<32x128xf32>
    %c0_50 = arith.constant 0 : index
    %c0_51 = arith.constant 0 : index
    %82 = vector.load %arg19[%c0_50, %c0_51] : memref<32x128xf32, #tpu.memory_space<vmem>>, vector<32x128xf32>
    tpu.vector_store %arg19[%c0_50, %c0_51], %81 {strides = array<i32>} : memref<32x128xf32, #tpu.memory_space<vmem>>, vector<32x128xf32>,
    return
  }
  func.func @transform_0(%arg0: i32) -> (i32, i32) {
    %c0_i32 = arith.constant 0 : i32
    %c0_i32_0 = arith.constant 0 : i32
    return %arg0, %c0_i32 : i32, i32
  }
  func.func @transform_1(%arg0: i32) -> (i32, i32) {
    %c0_i32 = arith.constant 0 : i32
    %c0_i32_0 = arith.constant 0 : i32
    %c0_i32_1 = arith.constant 0 : i32
    return %c0_i32, %c0_i32_0 : i32, i32
  }
  func.func @transform_2(%arg0: i32) -> (i32, i32) {
    %c0_i32 = arith.constant 0 : i32
    %c0_i32_0 = arith.constant 0 : i32
    %c0_i32_1 = arith.constant 0 : i32
    return %c0_i32, %c0_i32_0 : i32, i32
  }
  func.func @transform_3(%arg0: i32) -> (i32, i32) {
    %c0_i32 = arith.constant 0 : i32
    %c0_i32_0 = arith.constant 0 : i32
    %c0_i32_1 = arith.constant 0 : i32
    return %c0_i32, %c0_i32_0 : i32, i32
  }
  func.func @transform_4(%arg0: i32) -> (i32, i32) {
    %c0_i32 = arith.constant 0 : i32
    %c0_i32_0 = arith.constant 0 : i32
    %c0_i32_1 = arith.constant 0 : i32
    return %c0_i32, %c0_i32_0 : i32, i32
  }
  func.func @transform_5(%arg0: i32) -> (i32, i32) {
    %c0_i32 = arith.constant 0 : i32
    %c0_i32_0 = arith.constant 0 : i32
    %c0_i32_1 = arith.constant 0 : i32
    return %c0_i32, %c0_i32_0 : i32, i32
  }
  func.func @transform_6(%arg0: i32) -> (i32, i32) {
    %c0_i32 = arith.constant 0 : i32
    %c0_i32_0 = arith.constant 0 : i32
    %c0_i32_1 = arith.constant 0 : i32
    return %c0_i32, %c0_i32_0 : i32, i32
  }
  func.func @transform_7(%arg0: i32) -> (i32, i32) {
    %c0_i32 = arith.constant 0 : i32
    %c0_i32_0 = arith.constant 0 : i32
    %c0_i32_1 = arith.constant 0 : i32
    return %c0_i32, %c0_i32_0 : i32, i32
  }
  func.func @transform_8(%arg0: i32) -> (i32, i32) {
    %c0_i32 = arith.constant 0 : i32
    %c0_i32_0 = arith.constant 0 : i32
    %c0_i32_1 = arith.constant 0 : i32
    return %c0_i32, %c0_i32_0 : i32, i32
  }
  func.func @transform_9(%arg0: i32) -> (i32, i32) {
    %c0_i32 = arith.constant 0 : i32
    %c0_i32_0 = arith.constant 0 : i32
    %c0_i32_1 = arith.constant 0 : i32
    return %c0_i32, %c0_i32_0 : i32, i32
  }
  func.func @transform_10(%arg0: i32) -> (i32, i32) {
    %c0_i32 = arith.constant 0 : i32
    %c0_i32_0 = arith.constant 0 : i32
    %c0_i32_1 = arith.constant 0 : i32
    return %c0_i32, %c0_i32_0 : i32, i32
  }
  func.func @transform_11(%arg0: i32) -> (i32, i32) {
    %c0_i32 = arith.constant 0 : i32
    %c0_i32_0 = arith.constant 0 : i32
    %c0_i32_1 = arith.constant 0 : i32
    return %c0_i32, %c0_i32_0 : i32, i32
  }
  func.func @transform_12(%arg0: i32) -> (i32, i32) {
    %c0_i32 = arith.constant 0 : i32
    %c0_i32_0 = arith.constant 0 : i32
    %c0_i32_1 = arith.constant 0 : i32
    return %c0_i32, %c0_i32_0 : i32, i32
  }
  func.func @transform_13(%arg0: i32) -> (i32, i32) {
    %c0_i32 = arith.constant 0 : i32
    %c0_i32_0 = arith.constant 0 : i32
    %c0_i32_1 = arith.constant 0 : i32
    return %c0_i32, %c0_i32_0 : i32, i32
  }
  func.func @transform_14(%arg0: i32) -> (i32, i32) {
    %c0_i32 = arith.constant 0 : i32
    %c0_i32_0 = arith.constant 0 : i32
    %c0_i32_1 = arith.constant 0 : i32
    return %c0_i32, %c0_i32_0 : i32, i32
  }
  func.func @transform_15(%arg0: i32) -> (i32, i32) {
    %c0_i32 = arith.constant 0 : i32
    %c0_i32_0 = arith.constant 0 : i32
    %c0_i32_1 = arith.constant 0 : i32
    return %c0_i32, %c0_i32_0 : i32, i32
  }
  func.func @transform_16(%arg0: i32) -> (i32, i32) {
    %c0_i32 = arith.constant 0 : i32
    %c0_i32_0 = arith.constant 0 : i32
    %c0_i32_1 = arith.constant 0 : i32
    return %c0_i32, %c0_i32_0 : i32, i32
  }
  func.func @transform_17(%arg0: i32) -> (i32, i32) {
    %c0_i32 = arith.constant 0 : i32
    %c0_i32_0 = arith.constant 0 : i32
    return %arg0, %c0_i32 : i32, i32
  }
  func.func @transform_18(%arg0: i32) -> (i32, i32) {
    %c0_i32 = arith.constant 0 : i32
    %c0_i32_0 = arith.constant 0 : i32
    return %arg0, %c0_i32 : i32, i32
  }
}

</mosaic_0001>

<bundles_post_ra>
// kernel: tpu_custom_call.1
= control target key start
LH: loop header
LB: loop body
LE: loop exit
PB: predicated region body
PF: predicated region fallthrough
CT: control target
= control target key end

     0   :  { %s2769_s0 = inlined_call_operand.hbm [shape: f32[32,128], index: 0, kind: input, shape index: {}]   ;;  %s2770_s1 = inlined_call_operand.hbm [shape: f32[128,128], index: 1, kind: input, shape index: {}]   ;;  %s2771_s2 = inlined_call_operand.vmem [shape: f32[1,128], index: 2, kind: input, shape index: {}]   ;;  %s2772_s3 = inlined_call_operand.hbm [shape: f32[128,128], index: 3, kind: input, shape index: {}]   ;;  %s2773_s4 = inlined_call_operand.vmem [shape: f32[1,128], index: 4, kind: input, shape index: {}]   ;;  %s2774_s5 = inlined_call_operand.hbm [shape: f32[128,128], index: 5, kind: input, shape index: {}]   ;;  %s2775_s6 = inlined_call_operand.vmem [shape: f32[1,128], index: 6, kind: input, shape index: {}]   ;;  %s2776_s7 = inlined_call_operand.hbm [shape: f32[128,128], index: 7, kind: input, shape index: {}]   ;;  %s2777_s8 = inlined_call_operand.vmem [shape: f32[1,128], index: 8, kind: input, shape index: {}]   ;;  %s2778_s9 = inlined_call_operand.hbm [shape: f32[128,128], index: 9, kind: input, shape index: {}]   ;;  %s2779_s10 = inlined_call_operand.vmem [shape: f32[1,128], index: 10, kind: input, shape index: {}]   ;;  %s2780_s11 = inlined_call_operand.hbm [shape: f32[128,128], index: 11, kind: input, shape index: {}]   ;;  %s2781_s12 = inlined_call_operand.vmem [shape: f32[1,128], index: 12, kind: input, shape index: {}]   ;;  %s2782_s13 = inlined_call_operand.hbm [shape: f32[128,128], index: 13, kind: input, shape index: {}]   ;;  %s2783_s14 = inlined_call_operand.vmem [shape: f32[1,128], index: 14, kind: input, shape index: {}]   ;;  %s2784_s15 = inlined_call_operand.hbm [shape: f32[128,128], index: 15, kind: input, shape index: {}]   ;;  %s2785_s16 = inlined_call_operand.vmem [shape: f32[1,128], index: 16, kind: input, shape index: {}]   ;;  %s2786_s17 = inlined_call_operand.hbm [shape: f32[32,128], index: 17, kind: output, shape index: {0}]   ;;  %s2787_s18 = inlined_call_operand.hbm [shape: f32[32,128], index: 18, kind: output, shape index: {1}]  }
   0x1   :  { %2791 = sst [smem:[#allocation27_spill]] %s2769_s0 }
   0x2   :  { %2792 = sst [smem:[#allocation28_spill]] %s2770_s1 }
   0x3   :  { %2793 = sst [smem:[#allocation29_spill]] %s2771_s2 }
   0x4   :  { %2794 = sst [smem:[#allocation30_spill]] %s2787_s18 }
   0x5   :  { %24 = vsyncpa [#allocation3], 0 }
   0x6   :  { %25 = vsyncpa [#allocation6], 0 }
   0x7   :  { %26 = vsyncpa [#allocation9], 0 }
   0x8   :  { %27 = vsyncpa [#allocation12], 0 }
   0x9   :  { %28 = vsyncpa [#allocation15], 0 }
   0xa   :  { %29 = vsyncpa [#allocation4], 0 }
   0xb   :  { %30 = vsyncpa [#allocation19], 0  ;;  %s2444_s27 = smov [#allocation5]   ;;  %s2445_s29 = smov [#allocation8]  }
   0xc   :  { %s48_s28 = sshll.u32 %s2444_s27, 4  ;;  %s76_s30 = sshll.u32 %s2445_s29, 4  ;;  %s49_s28 = int_to_ptr.vmem [resolvable:$true] %s48_s28  ;;  %s2552_s30 = int_to_ptr.vmem [resolvable:$true] %s76_s30 }
   0xd   :  { %s2795_s1 = sld [smem:[#allocation28_spill]] }
  0x13   :  { %s2188_s20 = scalar_lea.hbm %s2795_s1, 2048 }
  0x14   :  { %p2189_p0 = scmp.ne.s32.totalorder %s2795_s1, %s2188_s20  ;;  %p2192_p1 = scmp.lt.u32.totalorder %s2188_s20, %s2795_s1 }
  0x16   :  { %p2194_p2 = pnand %p2192_p1, %p2189_p0 }
  0x18   :  { %2197 = shalt.err (!%p2194_p2)
}
  0x19   :  { %s2198_s24 = scalar_lea.vmem %s49_s28, 2048  ;;  %p2203_p4 = scmp.lt.s32.totalorder %s49_s28, %s49_s28 }
  0x1a   :  { %p2199_p3 = scmp.ne.s32.totalorder %s49_s28, %s2198_s24  ;;  %p2204_p5 = scmp.lt.s32.totalorder %s2198_s24, %s2198_s24 }
  0x1c   :  { %p2205_p6 = por %p2204_p5, %p2203_p4 }
  0x1e   :  { %p2206_p7 = pnand %p2205_p6, %p2199_p3 }
  0x20   :  { %2209 = shalt.err (!%p2206_p7)
}
  0x21   :  { %s2446_s25 = smov 128   ;;  %s2447_s26 = smov 8  }
  0x22   :  { %54 = dma.hbm_to_vmem [thread:$0]  %s2795_s1, 2048, %s49_s28, [#allocation6], %s2446_s25, %s2446_s25, %s2447_s26  }
  0x23   :  { %s2210_s20 = scalar_lea.hbm %s2774_s5, 2048 }
  0x24   :  { %p2211_p8 = scmp.ne.s32.totalorder %s2774_s5, %s2210_s20  ;;  %p2214_p9 = scmp.lt.u32.totalorder %s2210_s20, %s2774_s5 }
  0x26   :  { %p2216_p10 = pnand %p2214_p9, %p2211_p8 }
  0x28   :  { %2219 = shalt.err (!%p2216_p10)
}
  0x29   :  { %s2220_s24 = scalar_lea.vmem %s2552_s30, 2048  ;;  %p2225_p12 = scmp.lt.s32.totalorder %s2552_s30, %s2552_s30 }
  0x2a   :  { %p2221_p11 = scmp.ne.s32.totalorder %s2552_s30, %s2220_s24  ;;  %p2226_p13 = scmp.lt.s32.totalorder %s2220_s24, %s2220_s24 }
  0x2c   :  { %p2227_p0 = por %p2226_p13, %p2225_p12 }
  0x2e   :  { %p2228_p1 = pnand %p2227_p0, %p2221_p11 }
  0x30   :  { %2231 = shalt.err (!%p2228_p1)
}
  0x31   :  { %82 = dma.hbm_to_vmem [thread:$0]  %s2774_s5, 2048, %s2552_s30, [#allocation9], %s2446_s25, %s2446_s25, %s2447_s26  }
  0x32   :  { %s2448_s27 = smov [#allocation11]   ;;  %s2449_s0 = smov [#allocation14]  }
  0x33   :  { %s104_s29 = sshll.u32 %s2448_s27, 4  ;;  %s132_s19 = sshll.u32 %s2449_s0, 4  ;;  %s105_s29 = int_to_ptr.vmem [resolvable:$true] %s104_s29  ;;  %s2589_s19 = int_to_ptr.vmem [resolvable:$true] %s132_s19 }
  0x34   :  { %s2232_s22 = scalar_lea.hbm %s2778_s9, 2048 }
  0x35   :  { %p2233_p2 = scmp.ne.s32.totalorder %s2778_s9, %s2232_s22  ;;  %p2236_p3 = scmp.lt.u32.totalorder %s2232_s22, %s2778_s9 }
  0x37   :  { %p2238_p4 = pnand %p2236_p3, %p2233_p2 }
  0x39   :  { %2241 = shalt.err (!%p2238_p4)
}
  0x3a   :  { %s2242_s5 = scalar_lea.vmem %s105_s29, 2048  ;;  %p2247_p6 = scmp.lt.s32.totalorder %s105_s29, %s105_s29 }
  0x3b   :  { %p2243_p5 = scmp.ne.s32.totalorder %s105_s29, %s2242_s5  ;;  %p2248_p7 = scmp.lt.s32.totalorder %s2242_s5, %s2242_s5 }
  0x3d   :  { %p2249_p8 = por %p2248_p7, %p2247_p6 }
  0x3f   :  { %p2250_p9 = pnand %p2249_p8, %p2243_p5 }
  0x41   :  { %2253 = shalt.err (!%p2250_p9)
}
  0x42   :  { %110 = dma.hbm_to_vmem [thread:$0]  %s2778_s9, 2048, %s105_s29, [#allocation12], %s2446_s25, %s2446_s25, %s2447_s26  }
  0x43   :  { %s2254_s18 = scalar_lea.hbm %s2782_s13, 2048 }
  0x44   :  { %p2255_p10 = scmp.ne.s32.totalorder %s2782_s13, %s2254_s18  ;;  %p2258_p11 = scmp.lt.u32.totalorder %s2254_s18, %s2782_s13 }
  0x46   :  { %p2260_p12 = pnand %p2258_p11, %p2255_p10 }
  0x48   :  { %2263 = shalt.err (!%p2260_p12)
}
  0x49   :  { %s2264_s2 = scalar_lea.vmem %s2589_s19, 2048  ;;  %p2269_p0 = scmp.lt.s32.totalorder %s2589_s19, %s2589_s19 }
  0x4a   :  { %p2265_p13 = scmp.ne.s32.totalorder %s2589_s19, %s2264_s2  ;;  %p2270_p1 = scmp.lt.s32.totalorder %s2264_s2, %s2264_s2 }
  0x4c   :  { %p2271_p2 = por %p2270_p1, %p2269_p0 }
  0x4e   :  { %p2272_p3 = pnand %p2271_p2, %p2265_p13 }
  0x50   :  { %2275 = shalt.err (!%p2272_p3)
}
  0x51   :  { %138 = dma.hbm_to_vmem [thread:$0]  %s2782_s13, 2048, %s2589_s19, [#allocation15], %s2446_s25, %s2446_s25, %s2447_s26  }
  0x52   :  { %s2450_s23 = smov [#allocation2]   ;;  %s2451_s5 = smov [#allocation7]  }
  0x53   :  { %s36_s24 = sshll.u32 %s2450_s23, 4  ;;  %s62_s30 = sshll.u32 %s2451_s5, 4  ;;  %s37_s24 = int_to_ptr.vmem [resolvable:$true] %s36_s24  ;;  %s2626_s30 = int_to_ptr.vmem [resolvable:$true] %s62_s30 }
  0x54   :  { %s2796_s27 = sld [smem:[#allocation27_spill]] }
  0x5a   :  { %s2276_s18 = scalar_lea.hbm %s2796_s27, 512 }
  0x5b   :  { %p2277_p4 = scmp.ne.s32.totalorder %s2796_s27, %s2276_s18  ;;  %p2280_p5 = scmp.lt.u32.totalorder %s2276_s18, %s2796_s27 }
  0x5d   :  { %p2282_p6 = pnand %p2280_p5, %p2277_p4 }
  0x5f   :  { %2285 = shalt.err (!%p2282_p6)
}
  0x60   :  { %s2286_s13 = scalar_lea.vmem %s37_s24, 512  ;;  %p2291_p8 = scmp.lt.s32.totalorder %s37_s24, %s37_s24 }
  0x61   :  { %p2287_p7 = scmp.ne.s32.totalorder %s37_s24, %s2286_s13  ;;  %p2292_p9 = scmp.lt.s32.totalorder %s2286_s13, %s2286_s13 }
  0x63   :  { %p2293_p10 = por %p2292_p9, %p2291_p8 }
  0x65   :  { %p2294_p11 = pnand %p2293_p10, %p2287_p7 }
  0x67   :  { %2297 = shalt.err (!%p2294_p11)
}
  0x68   :  { %42 = dma.hbm_to_vmem [thread:$0]  %s2796_s27, 512, %s37_s24, [#allocation3], %s2446_s25, %s2446_s25, %s2447_s26  }
  0x69   :  { %s2298_s23 = scalar_lea.hbm %s2772_s3, 2048 }
  0x6a   :  { %p2299_p12 = scmp.ne.s32.totalorder %s2772_s3, %s2298_s23  ;;  %p2302_p13 = scmp.lt.u32.totalorder %s2298_s23, %s2772_s3 }
  0x6c   :  { %p2304_p0 = pnand %p2302_p13, %p2299_p12 }
  0x6e   :  { %2307 = shalt.err (!%p2304_p0)
}
  0x6f   :  { %s2308_s0 = scalar_lea.vmem %s2626_s30, 2048  ;;  %p2313_p2 = scmp.lt.s32.totalorder %s2626_s30, %s2626_s30 }
  0x70   :  { %p2309_p1 = scmp.ne.s32.totalorder %s2626_s30, %s2308_s0  ;;  %p2314_p3 = scmp.lt.s32.totalorder %s2308_s0, %s2308_s0 }
  0x72   :  { %p2315_p4 = por %p2314_p3, %p2313_p2 }
  0x74   :  { %p2316_p5 = pnand %p2315_p4, %p2309_p1 }
  0x76   :  { %2319 = shalt.err (!%p2316_p5)
}
  0x77   :  { %68 = dma.hbm_to_vmem [thread:$0]  %s2772_s3, 2048, %s2626_s30, [#allocation6], %s2446_s25, %s2446_s25, %s2447_s26  }
  0x78   :  { %s2452_s20 = smov [#allocation10]   ;;  %s2453_s22 = smov [#allocation13]  }
  0x79   :  { %s90_s21 = sshll.u32 %s2452_s20, 4  ;;  %s118_s13 = sshll.u32 %s2453_s22, 4  ;;  %s91_s21 = int_to_ptr.vmem [resolvable:$true] %s90_s21  ;;  %s2663_s13 = int_to_ptr.vmem [resolvable:$true] %s118_s13 }
  0x7a   :  { %s2320_s9 = scalar_lea.hbm %s2776_s7, 2048 }
  0x7b   :  { %p2321_p6 = scmp.ne.s32.totalorder %s2776_s7, %s2320_s9  ;;  %p2324_p7 = scmp.lt.u32.totalorder %s2320_s9, %s2776_s7 }
  0x7d   :  { %p2326_p8 = pnand %p2324_p7, %p2321_p6 }
  0x7f   :  { %2329 = shalt.err (!%p2326_p8)
}
  0x80   :  { %s2330_s3 = scalar_lea.vmem %s91_s21, 2048  ;;  %p2335_p10 = scmp.lt.s32.totalorder %s91_s21, %s91_s21 }
  0x81   :  { %p2331_p9 = scmp.ne.s32.totalorder %s91_s21, %s2330_s3  ;;  %p2336_p11 = scmp.lt.s32.totalorder %s2330_s3, %s2330_s3 }
  0x83   :  { %p2337_p12 = por %p2336_p11, %p2335_p10 }
  0x85   :  { %p2338_p13 = pnand %p2337_p12, %p2331_p9 }
  0x87   :  { %2341 = shalt.err (!%p2338_p13)
}
  0x88   :  { %96 = dma.hbm_to_vmem [thread:$0]  %s2776_s7, 2048, %s91_s21, [#allocation9], %s2446_s25, %s2446_s25, %s2447_s26  }
  0x89   :  { %s2342_s24 = scalar_lea.hbm %s2780_s11, 2048 }
  0x8a   :  { %p2343_p0 = scmp.ne.s32.totalorder %s2780_s11, %s2342_s24  ;;  %p2346_p1 = scmp.lt.u32.totalorder %s2342_s24, %s2780_s11 }
  0x8c   :  { %p2348_p2 = pnand %p2346_p1, %p2343_p0 }
  0x8e   :  { %2351 = shalt.err (!%p2348_p2)
}
  0x8f   :  { %s2352_s2 = scalar_lea.vmem %s2663_s13, 2048  ;;  %p2357_p4 = scmp.lt.s32.totalorder %s2663_s13, %s2663_s13 }
  0x90   :  { %p2353_p3 = scmp.ne.s32.totalorder %s2663_s13, %s2352_s2  ;;  %p2358_p5 = scmp.lt.s32.totalorder %s2352_s2, %s2352_s2 }
  0x92   :  { %p2359_p6 = por %p2358_p5, %p2357_p4 }
  0x94   :  { %p2360_p7 = pnand %p2359_p6, %p2353_p3 }
  0x96   :  { %2363 = shalt.err (!%p2360_p7)
}
  0x97   :  { %124 = dma.hbm_to_vmem [thread:$0]  %s2780_s11, 2048, %s2663_s13, [#allocation12], %s2446_s25, %s2446_s25, %s2447_s26  }
  0x98   :  { %s2454_s9 = smov [#allocation16]   ;;  %s2364_s28 = scalar_lea.hbm %s2784_s15, 2048 }
  0x99   :  { %s146_s29 = sshll.u32 %s2454_s9, 4  ;;  %p2365_p8 = scmp.ne.s32.totalorder %s2784_s15, %s2364_s28  ;;  %s147_s29 = int_to_ptr.vmem [resolvable:$true] %s146_s29 }
  0x9a   :  { %p2368_p9 = scmp.lt.u32.totalorder %s2364_s28, %s2784_s15 }
  0x9c   :  { %p2370_p10 = pnand %p2368_p9, %p2365_p8 }
  0x9e   :  { %2373 = shalt.err (!%p2370_p10)
}
  0x9f   :  { %s2374_s0 = scalar_lea.vmem %s147_s29, 2048  ;;  %p2379_p12 = scmp.lt.s32.totalorder %s147_s29, %s147_s29 }
  0xa0   :  { %p2375_p11 = scmp.ne.s32.totalorder %s147_s29, %s2374_s0  ;;  %p2380_p13 = scmp.lt.s32.totalorder %s2374_s0, %s2374_s0 }
  0xa2   :  { %p2381_p0 = por %p2380_p13, %p2379_p12 }
  0xa4   :  { %p2382_p1 = pnand %p2381_p0, %p2375_p11 }
  0xa6   :  { %2385 = shalt.err (!%p2382_p1)
}
  0xa7   :  { %152 = dma.hbm_to_vmem [thread:$0]  %s2784_s15, 2048, %s147_s29, [#allocation15], %s2446_s25, %s2446_s25, %s2447_s26  }
  0xa8   :  { %2430 = dma.done.wait [#allocation3], 512  }
  0xa9   :  { %2431 = vsyncadd [#allocation3], 4294966784 }
  0xaa   :  { %2432 = dma.done.wait [#allocation6], 4096  }
  0xab   :  { %2433 = vsyncadd [#allocation6], 4294963200 }
  0xac   :  { %2434 = dma.done.wait [#allocation9], 4096  }
  0xad   :  { %2435 = vsyncadd [#allocation9], 4294963200 }
  0xae   :  { %2436 = dma.done.wait [#allocation12], 4096  }
  0xaf   :  { %2437 = vsyncadd [#allocation12], 4294963200 }
  0xb0   :  { %2438 = dma.done.wait [#allocation15], 4096  }
  0xb1   :  { %2439 = vsyncadd [#allocation15], 4294963200  ;;  %v186_v0 = vld [vmem:[#allocation5] sm:$0xff]  ;;  %v187_v1 = vld [vmem:[#allocation5 + $0x8] sm:$0xff]  ;;  %s2797_s27 = sld [smem:[#allocation29_spill]] }
  0xb2   :  { %v188_v2 = vld [vmem:[#allocation5 + $0x10] sm:$0xff]  ;;  %v1791_v3 = vpack.c.bf16 %v187_v1, %v186_v0  ;;  %v189_v4 = vld [vmem:[#allocation5 + $0x18] sm:$0xff]  ;;  %v190_v6 = vld [vmem:[#allocation5 + $0x20] sm:$0xff] }
  0xb3   :  { %v1795_v5 = vpack.c.bf16 %v189_v4, %v188_v2  ;;  %v191_v7 = vld [vmem:[#allocation5 + $0x28] sm:$0xff]  ;;  %v182_v9 = vld [vmem:[#allocation2] sm:$0xff]  ;;  %v192_v10 = vld [vmem:[#allocation5 + $0x30] sm:$0xff] }
  0xb4   :  { %1792 = vmatprep.subr.bf16.mxu0 %v1791_v3  ;;  %v1799_v8 = vpack.c.bf16 %v191_v7, %v190_v6  ;;  %v193_v11 = vld [vmem:[#allocation5 + $0x38] sm:$0xff]  ;;  %1519 = vmatprep.mubr.f32.mxu0 %v182_v9  ;;  %v318_v12 = vld [vmem:[#allocation7] sm:$0xff]  ;;  %v319_v13 = vld [vmem:[#allocation7 + $0x8] sm:$0xff] }
  0xb5   :  { %1794 = vmatpush3.bf16.msra.mxu0 %v1791_v3  ;;  %v1823_v14 = vpack.c.bf16 %v319_v13, %v318_v12  ;;  %v1803_v15 = vpack.c.bf16 %v193_v11, %v192_v10  ;;  %v194_v16 = vld [vmem:[#allocation5 + $0x40] sm:$0xff]  ;;  %v195_v17 = vld [vmem:[#allocation5 + $0x48] sm:$0xff]  ;;  %v196_v19 = vld [vmem:[#allocation5 + $0x50] sm:$0xff] }
  0xb6   :  { %1796 = vmatprep.subr.bf16.mxu0 %v1795_v5  ;;  %v1807_v18 = vpack.c.bf16 %v195_v17, %v194_v16  ;;  %v197_v20 = vld [vmem:[#allocation5 + $0x58] sm:$0xff]  ;;  %v198_v22 = vld [vmem:[#allocation5 + $0x60] sm:$0xff]  ;;  %v199_v23 = vld [vmem:[#allocation5 + $0x68] sm:$0xff] }
  0xb7   :  { %1824 = vmatprep.subr.bf16.mxu1 %v1823_v14  ;;  %v1811_v21 = vpack.c.bf16 %v197_v20, %v196_v19  ;;  %v1815_v24 = vpack.c.bf16 %v199_v23, %v198_v22  ;;  %v200_v25 = vld [vmem:[#allocation5 + $0x70] sm:$0xff]  ;;  %v201_v26 = vld [vmem:[#allocation5 + $0x78] sm:$0xff]  ;;  %v183_v28 = vld [vmem:[#allocation2 + $0x8] sm:$0xff] }
  0xb8   :  { %1826 = vmatpush3.bf16.msra.mxu1 %v1823_v14  ;;  %v1819_v27 = vpack.c.bf16 %v201_v26, %v200_v25  ;;  %v184_v29 = vld [vmem:[#allocation2 + $0x10] sm:$0xff]  ;;  %v185_v30 = vld [vmem:[#allocation2 + $0x18] sm:$0xff]  ;;  %v322_v34 = vld [vmem:[#allocation7 + $0x20] sm:$0xff] }
  0xb9   :  { %1798 = vmatpush3.bf16.msra.mxu0 %v1795_v5  ;;  %v320_v31 = vld [vmem:[#allocation7 + $0x10] sm:$0xff]  ;;  %v321_v32 = vld [vmem:[#allocation7 + $0x18] sm:$0xff]  ;;  %v323_v35 = vld [vmem:[#allocation7 + $0x28] sm:$0xff] }
  0xba   :  { %1800 = vmatprep.subr.bf16.mxu0 %v1799_v8  ;;  %v1827_v33 = vpack.c.bf16 %v321_v32, %v320_v31  ;;  %v1831_v36 = vpack.c.bf16 %v323_v35, %v322_v34  ;;  %v324_v37 = vld [vmem:[#allocation7 + $0x30] sm:$0xff]  ;;  %v325_v38 = vld [vmem:[#allocation7 + $0x38] sm:$0xff]  ;;  %v326_v40 = vld [vmem:[#allocation7 + $0x40] sm:$0xff] }
  0xbb   :  { %v1835_v39 = vpack.c.bf16 %v325_v38, %v324_v37  ;;  %v327_v41 = vld [vmem:[#allocation7 + $0x48] sm:$0xff]  ;;  %v328_v43 = vld [vmem:[#allocation7 + $0x50] sm:$0xff]  ;;  %v329_v44 = vld [vmem:[#allocation7 + $0x58] sm:$0xff] }
  0xbc   :  { %1828 = vmatprep.subr.bf16.mxu1 %v1827_v33  ;;  %v1839_v42 = vpack.c.bf16 %v327_v41, %v326_v40  ;;  %v1843_v45 = vpack.c.bf16 %v329_v44, %v328_v43  ;;  %v330_v46 = vld [vmem:[#allocation7 + $0x60] sm:$0xff]  ;;  %v331_v47 = vld [vmem:[#allocation7 + $0x68] sm:$0xff]  ;;  %v332_v49 = vld [vmem:[#allocation7 + $0x70] sm:$0xff] }
  0xbd   :  { %1802 = vmatpush3.bf16.msra.mxu0 %v1799_v8  ;;  %1830 = vmatpush3.bf16.msra.mxu1 %v1827_v33  ;;  %v1847_v48 = vpack.c.bf16 %v331_v47, %v330_v46  ;;  %v333_v50 = vld [vmem:[#allocation7 + $0x78] sm:$0xff]  ;;  %v450_v52 = vld [vmem:[#allocation8] sm:$0xff]  ;;  %v451_v53 = vld [vmem:[#allocation8 + $0x8] sm:$0xff] }
  0xbe   :  { %1804 = vmatprep.subr.bf16.mxu0 %v1803_v15  ;;  %1832 = vmatprep.subr.bf16.mxu1 %v1831_v36  ;;  %v1851_v51 = vpack.c.bf16 %v333_v50, %v332_v49  ;;  %v1855_v54 = vpack.c.bf16 %v451_v53, %v450_v52  ;;  %v1287_v55 = vld [vmem:[%s2797_s27] ss:$0 sm:$0xff]  ;;  %v452_v16 = vld [vmem:[#allocation8 + $0x10] sm:$0xff]  ;;  %v453_v17 = vld [vmem:[#allocation8 + $0x18] sm:$0xff] }
  0xbf   :  { %v454_v19 = vld [vmem:[#allocation8 + $0x20] sm:$0xff]  ;;  %v455_v20 = vld [vmem:[#allocation8 + $0x28] sm:$0xff]  ;;  %v456_v22 = vld [vmem:[#allocation8 + $0x30] sm:$0xff] }
  0xc0   :  { %v457_v23 = vld [vmem:[#allocation8 + $0x38] sm:$0xff]  ;;  %v458_v25 = vld [vmem:[#allocation8 + $0x40] sm:$0xff]  ;;  %v459_v26 = vld [vmem:[#allocation8 + $0x48] sm:$0xff] }
  0xc1   :  { %1806 = vmatpush3.bf16.msra.mxu0 %v1803_v15  ;;  %1834 = vmatpush3.bf16.msra.mxu1 %v1831_v36  ;;  %v462_v31 = vld [vmem:[#allocation8 + $0x60] sm:$0xff]  ;;  %v463_v32 = vld [vmem:[#allocation8 + $0x68] sm:$0xff]  ;;  %v464_v34 = vld [vmem:[#allocation8 + $0x70] sm:$0xff] }
  0xc2   :  { %1808 = vmatprep.subr.bf16.mxu0 %v1807_v18  ;;  %1836 = vmatprep.subr.bf16.mxu1 %v1835_v39  ;;  %v1879_v33 = vpack.c.bf16 %v463_v32, %v462_v31  ;;  %v465_v35 = vld [vmem:[#allocation8 + $0x78] sm:$0xff]  ;;  %v582_v37 = vld [vmem:[#allocation10] sm:$0xff]  ;;  %v583_v38 = vld [vmem:[#allocation10 + $0x8] sm:$0xff] }
  0xc3   :  { %v1883_v36 = vpack.c.bf16 %v465_v35, %v464_v34  ;;  %v1292_v40 = vld [vmem:[%s2773_s4] ss:$0 sm:$0xff] }
  0xc5   :  { %1810 = vmatpush3.bf16.msra.mxu0 %v1807_v18  ;;  %1838 = vmatpush3.bf16.msra.mxu1 %v1835_v39  ;;  %v1859_v18 = vpack.c.bf16 %v453_v17, %v452_v16  ;;  %v1887_v39 = vpack.c.bf16 %v583_v38, %v582_v37  ;;  %v594_v16 = vld [vmem:[#allocation10 + $0x60] sm:$0xff]  ;;  %v595_v17 = vld [vmem:[#allocation10 + $0x68] sm:$0xff] }
  0xc6   :  { %1812 = vmatprep.subr.bf16.mxu0 %v1811_v21  ;;  %1840 = vmatprep.subr.bf16.mxu1 %v1839_v42 }
  0xc9   :  { %1814 = vmatpush3.bf16.msra.mxu0 %v1811_v21  ;;  %1842 = vmatpush3.bf16.msra.mxu1 %v1839_v42  ;;  %v1863_v21 = vpack.c.bf16 %v455_v20, %v454_v19  ;;  %v596_v19 = vld [vmem:[#allocation10 + $0x70] sm:$0xff]  ;;  %v597_v20 = vld [vmem:[#allocation10 + $0x78] sm:$0xff] }
  0xca   :  { %1816 = vmatprep.subr.bf16.mxu0 %v1815_v24  ;;  %1844 = vmatprep.subr.bf16.mxu1 %v1843_v45 }
  0xcd   :  { %1818 = vmatpush3.bf16.msra.mxu0 %v1815_v24  ;;  %1846 = vmatpush3.bf16.msra.mxu1 %v1843_v45  ;;  %v1867_v24 = vpack.c.bf16 %v457_v23, %v456_v22  ;;  %v718_v22 = vld [vmem:[#allocation11] sm:$0xff]  ;;  %v719_v23 = vld [vmem:[#allocation11 + $0x8] sm:$0xff] }
  0xce   :  { %1820 = vmatprep.subr.bf16.mxu0 %v1819_v27  ;;  %1848 = vmatprep.subr.bf16.mxu1 %v1847_v48 }
  0xd1   :  { %1822 = vmatpush3.bf16.msra.mxu0 %v1819_v27  ;;  %1850 = vmatpush3.bf16.msra.mxu1 %v1847_v48  ;;  %v1871_v27 = vpack.c.bf16 %v459_v26, %v458_v25  ;;  %v1297_v25 = vld [vmem:[%s2775_s6] ss:$0 sm:$0xff] }
  0xd2   :  { %1852 = vmatprep.subr.bf16.mxu1 %v1851_v51  ;;  %1856 = vmatprep.subr.bf16.mxu0 %v1855_v54 }
  0xd4   :  { %1520 = vmatmul.mubr.f32.vlgmr.msra.gmra.mrb[0].mxu0 %v183_v28  ;;  %v460_v28 = vld [vmem:[#allocation8 + $0x50] sm:$0xff] }
  0xd5   :  { %1522 = vmatprep.mubr.f32.mxu0 %v184_v29  ;;  %1854 = vmatpush3.bf16.msra.mxu1 %v1851_v51  ;;  %v461_v29 = vld [vmem:[#allocation8 + $0x58] sm:$0xff] }
  0xd6   :  { %1858 = vmatpush3.bf16.msra.mxu0 %v1855_v54  ;;  %1888 = vmatprep.subr.bf16.mxu1 %v1887_v39 }
  0xd7   :  { %1860 = vmatprep.subr.bf16.mxu0 %v1859_v18 }
  0xd8   :  { %1523 = vmatmul.mubr.f32.gmra.mrb[2].mxu0 %v185_v30  ;;  %v1875_v30 = vpack.c.bf16 %v461_v29, %v460_v28 }
  0xda   :  { %1862 = vmatpush3.bf16.msra.mxu0 %v1859_v18  ;;  %v1911_v18 = vpack.c.bf16 %v595_v17, %v594_v16 }
  0xdb   :  { %1864 = vmatprep.subr.bf16.mxu0 %v1863_v21 }
  0xde   :  { %1866 = vmatpush3.bf16.msra.mxu0 %v1863_v21  ;;  %v1915_v21 = vpack.c.bf16 %v597_v20, %v596_v19 }
  0xdf   :  { %1868 = vmatprep.subr.bf16.mxu0 %v1867_v24 }
  0xe2   :  { %1870 = vmatpush3.bf16.msra.mxu0 %v1867_v24  ;;  %v1919_v24 = vpack.c.bf16 %v719_v23, %v718_v22 }
  0xe3   :  { %1872 = vmatprep.subr.bf16.mxu0 %v1871_v27 }
  0xe6   :  { %1874 = vmatpush3.bf16.msra.mxu0 %v1871_v27 }
  0xe7   :  { %1876 = vmatprep.subr.bf16.mxu0 %v1875_v30 }
  0xea   :  { %1878 = vmatpush3.bf16.msra.mxu0 %v1875_v30 }
  0xeb   :  { %1880 = vmatprep.subr.bf16.mxu0 %v1879_v33 }
  0xee   :  { %1882 = vmatpush3.bf16.msra.mxu0 %v1879_v33 }
  0xef   :  { %1884 = vmatprep.subr.bf16.mxu0 %v1883_v36 }
  0xf2   :  { %1886 = vmatpush3.bf16.msra.mxu0 %v1883_v36 }
  0xf3   :  { %1920 = vmatprep.subr.bf16.mxu0 %v1919_v24 }
 0x1a7   :  { %v1521_v56 = vpop.f32.mrb[0].mxu0 }
 0x1a8   :  { %v281_v57 = vadd.f32 %v1521_v56, %v1287_v55  ;;  %v275_v58 = vpop.f32.mrb[1].mxu0 }
 0x1a9   :  { %v276_v59 = vadd.f32 %v1287_v55, %v275_v58 }
 0x1aa   :  { %v1289_v60 = vmul.f32 -1.442695, %v281_v57 }
 0x1ab   :  { %v1288_v61 = vmul.f32 -1.442695, %v276_v59  ;;  %v1524_v62 = vpop.f32.mrb[2].mxu0 }
 0x1ac   :  { %2060 = vpow2.f32 %v1289_v60  ;;  %v291_v63 = vadd.f32 %v1524_v62, %v1287_v55  ;;  %v285_v0 = vpop.f32.mrb[3].mxu0 }
 0x1ad   :  { %2062 = vpow2.f32 %v1288_v61  ;;  %v286_v1 = vadd.f32 %v1287_v55, %v285_v0 }
 0x1ae   :  { %v1291_v2 = vmul.f32 -1.442695, %v291_v63 }
 0x1af   :  { %v1290_v3 = vmul.f32 -1.442695, %v286_v1  ;;  %v584_v1 = vld [vmem:[#allocation10 + $0x10] sm:$0xff] }
 0x1b0   :  { %2064 = vpow2.f32 %v1291_v2  ;;  %v585_v2 = vld [vmem:[#allocation10 + $0x18] sm:$0xff] }
 0x1b1   :  { %2066 = vpow2.f32 %v1290_v3  ;;  %v1891_v3 = vpack.c.bf16 %v585_v2, %v584_v1  ;;  %v730_v1 = vld [vmem:[#allocation11 + $0x60] sm:$0xff]  ;;  %v731_v2 = vld [vmem:[#allocation11 + $0x68] sm:$0xff] }
 0x1b6   :  { %v2061_v4 = vpop.eup %2060 }
 0x1b7   :  { %v2063_v5 = vpop.eup %2062  ;;  %v307_v6 = vadd.f32 1.0, %v2061_v4  ;;  %v586_v4 = vld [vmem:[#allocation10 + $0x20] sm:$0xff] }
 0x1b8   :  { %v306_v7 = vadd.f32 1.0, %v2063_v5  ;;  %v587_v5 = vld [vmem:[#allocation10 + $0x28] sm:$0xff] }
 0x1ba   :  { %v2065_v8 = vpop.eup %2064  ;;  %2068 = vrcp.f32 %v306_v7  ;;  %v588_v7 = vld [vmem:[#allocation10 + $0x30] sm:$0xff] }
 0x1bb   :  { %v2067_v9 = vpop.eup %2066  ;;  %2070 = vrcp.f32 %v307_v6  ;;  %v309_v10 = vadd.f32 1.0, %v2065_v8  ;;  %v1895_v6 = vpack.c.bf16 %v587_v5, %v586_v4  ;;  %v589_v8 = vld [vmem:[#allocation10 + $0x38] sm:$0xff]  ;;  %v732_v4 = vld [vmem:[#allocation11 + $0x70] sm:$0xff] }
 0x1bc   :  { %v308_v11 = vadd.f32 1.0, %v2067_v9  ;;  %v1899_v9 = vpack.c.bf16 %v589_v8, %v588_v7  ;;  %v733_v5 = vld [vmem:[#allocation11 + $0x78] sm:$0xff]  ;;  %v850_v7 = vld [vmem:[#allocation13] sm:$0xff]  ;;  %v851_v8 = vld [vmem:[#allocation13 + $0x8] sm:$0xff] }
 0x1be   :  { %2072 = vrcp.f32 %v308_v11  ;;  %v591_v11 = vld [vmem:[#allocation10 + $0x48] sm:$0xff] }
 0x1bf   :  { %2074 = vrcp.f32 %v309_v10  ;;  %v590_v10 = vld [vmem:[#allocation10 + $0x40] sm:$0xff] }
 0x1c4   :  { %v2069_v12 = vpop.eup %2068 }
 0x1c5   :  { %v2071_v13 = vpop.eup %2070  ;;  %1557 = vmatprep.mubr.f32.mxu1 %v2069_v12  ;;  %v1903_v12 = vpack.c.bf16 %v591_v11, %v590_v10  ;;  %v1302_v10 = vld [vmem:[%s2777_s8] ss:$0 sm:$0xff] }
 0x1c6   :  { %1558 = vmatmul.mubr.f32.vlgmr.msra.gmra.mrb[0].mxu1 %v2071_v13  ;;  %v592_v13 = vld [vmem:[#allocation10 + $0x50] sm:$0xff] }
 0x1c7   :  { %1890 = vmatpush3.bf16.msra.mxu1 %v1887_v39 }
 0x1c8   :  { %v2073_v14 = vpop.eup %2072  ;;  %1892 = vmatprep.subr.bf16.mxu1 %v1891_v3 }
 0x1c9   :  { %v2075_v15 = vpop.eup %2074  ;;  %1560 = vmatprep.mubr.f32.mxu1 %v2073_v14  ;;  %v593_v14 = vld [vmem:[#allocation10 + $0x58] sm:$0xff] }
 0x1ca   :  { %1561 = vmatmul.mubr.f32.gmra.mrb[2].mxu1 %v2075_v15  ;;  %v1907_v15 = vpack.c.bf16 %v593_v14, %v592_v13 }
 0x1cb   :  { %1894 = vmatpush3.bf16.msra.mxu1 %v1891_v3  ;;  %v1943_v3 = vpack.c.bf16 %v731_v2, %v730_v1 }
 0x1cc   :  { %1896 = vmatprep.subr.bf16.mxu1 %v1895_v6 }
 0x1cf   :  { %1898 = vmatpush3.bf16.msra.mxu1 %v1895_v6  ;;  %v1947_v6 = vpack.c.bf16 %v733_v5, %v732_v4 }
 0x1d0   :  { %1900 = vmatprep.subr.bf16.mxu1 %v1899_v9 }
 0x1d3   :  { %1902 = vmatpush3.bf16.msra.mxu1 %v1899_v9  ;;  %v1951_v9 = vpack.c.bf16 %v851_v8, %v850_v7 }
 0x1d4   :  { %1904 = vmatprep.subr.bf16.mxu1 %v1903_v12 }
 0x1d7   :  { %1906 = vmatpush3.bf16.msra.mxu1 %v1903_v12 }
 0x1d8   :  { %1908 = vmatprep.subr.bf16.mxu1 %v1907_v15 }
 0x1db   :  { %1910 = vmatpush3.bf16.msra.mxu1 %v1907_v15 }
 0x1dc   :  { %1912 = vmatprep.subr.bf16.mxu1 %v1911_v18 }
 0x1df   :  { %1914 = vmatpush3.bf16.msra.mxu1 %v1911_v18 }
 0x1e0   :  { %1916 = vmatprep.subr.bf16.mxu1 %v1915_v21 }
 0x1e3   :  { %1918 = vmatpush3.bf16.msra.mxu1 %v1915_v21 }
 0x1e4   :  { %1952 = vmatprep.subr.bf16.mxu1 %v1951_v9 }
 0x299   :  { %v1559_v41 = vpop.f32.mrb[0].mxu1 }
 0x29a   :  { %v413_v42 = vadd.f32 %v1559_v41, %v1292_v40  ;;  %v407_v43 = vpop.f32.mrb[1].mxu1 }
 0x29b   :  { %v408_v44 = vadd.f32 %v1292_v40, %v407_v43 }
 0x29c   :  { %v1294_v45 = vmul.f32 -1.442695, %v413_v42 }
 0x29d   :  { %v1293_v46 = vmul.f32 -1.442695, %v408_v44  ;;  %v1562_v47 = vpop.f32.mrb[2].mxu1 }
 0x29e   :  { %2076 = vpow2.f32 %v1294_v45  ;;  %v423_v48 = vadd.f32 %v1562_v47, %v1292_v40  ;;  %v417_v49 = vpop.f32.mrb[3].mxu1 }
 0x29f   :  { %2078 = vpow2.f32 %v1293_v46  ;;  %v418_v50 = vadd.f32 %v1292_v40, %v417_v49 }
 0x2a0   :  { %v1296_v51 = vmul.f32 -1.442695, %v423_v48 }
 0x2a1   :  { %v1295_v52 = vmul.f32 -1.442695, %v418_v50  ;;  %v720_v50 = vld [vmem:[#allocation11 + $0x10] sm:$0xff] }
 0x2a2   :  { %2080 = vpow2.f32 %v1296_v51  ;;  %v721_v51 = vld [vmem:[#allocation11 + $0x18] sm:$0xff] }
 0x2a3   :  { %2082 = vpow2.f32 %v1295_v52  ;;  %v1923_v52 = vpack.c.bf16 %v721_v51, %v720_v50  ;;  %v862_v50 = vld [vmem:[#allocation13 + $0x60] sm:$0xff]  ;;  %v863_v51 = vld [vmem:[#allocation13 + $0x68] sm:$0xff] }
 0x2a8   :  { %v2077_v53 = vpop.eup %2076 }
 0x2a9   :  { %v2079_v54 = vpop.eup %2078  ;;  %v439_v55 = vadd.f32 1.0, %v2077_v53  ;;  %v722_v53 = vld [vmem:[#allocation11 + $0x20] sm:$0xff] }
 0x2aa   :  { %v438_v56 = vadd.f32 1.0, %v2079_v54  ;;  %v723_v54 = vld [vmem:[#allocation11 + $0x28] sm:$0xff] }
 0x2ac   :  { %v2081_v57 = vpop.eup %2080  ;;  %2084 = vrcp.f32 %v438_v56  ;;  %v724_v56 = vld [vmem:[#allocation11 + $0x30] sm:$0xff] }
 0x2ad   :  { %v2083_v58 = vpop.eup %2082  ;;  %2086 = vrcp.f32 %v439_v55  ;;  %v441_v59 = vadd.f32 1.0, %v2081_v57  ;;  %v1927_v55 = vpack.c.bf16 %v723_v54, %v722_v53  ;;  %v725_v57 = vld [vmem:[#allocation11 + $0x38] sm:$0xff]  ;;  %v864_v53 = vld [vmem:[#allocation13 + $0x70] sm:$0xff] }
 0x2ae   :  { %v440_v60 = vadd.f32 1.0, %v2083_v58  ;;  %v1931_v58 = vpack.c.bf16 %v725_v57, %v724_v56  ;;  %v865_v54 = vld [vmem:[#allocation13 + $0x78] sm:$0xff]  ;;  %v982_v56 = vld [vmem:[#allocation14] sm:$0xff]  ;;  %v983_v57 = vld [vmem:[#allocation14 + $0x8] sm:$0xff] }
 0x2b0   :  { %2088 = vrcp.f32 %v440_v60  ;;  %v727_v60 = vld [vmem:[#allocation11 + $0x48] sm:$0xff] }
 0x2b1   :  { %2090 = vrcp.f32 %v441_v59  ;;  %v726_v59 = vld [vmem:[#allocation11 + $0x40] sm:$0xff] }
 0x2b6   :  { %v2085_v61 = vpop.eup %2084 }
 0x2b7   :  { %v2087_v62 = vpop.eup %2086  ;;  %1595 = vmatprep.mubr.f32.mxu0 %v2085_v61  ;;  %v1935_v61 = vpack.c.bf16 %v727_v60, %v726_v59  ;;  %v1307_v59 = vld [vmem:[%s2779_s10] ss:$0 sm:$0xff] }
 0x2b8   :  { %1596 = vmatmul.mubr.f32.vlgmr.msra.gmra.mrb[4].mxu0 %v2087_v62  ;;  %v728_v62 = vld [vmem:[#allocation11 + $0x50] sm:$0xff] }
 0x2b9   :  { %1922 = vmatpush3.bf16.msra.mxu0 %v1919_v24 }
 0x2ba   :  { %v2089_v63 = vpop.eup %2088  ;;  %1924 = vmatprep.subr.bf16.mxu0 %v1923_v52 }
 0x2bb   :  { %v2091_v0 = vpop.eup %2090  ;;  %1598 = vmatprep.mubr.f32.mxu0 %v2089_v63  ;;  %v729_v63 = vld [vmem:[#allocation11 + $0x58] sm:$0xff] }
 0x2bc   :  { %1599 = vmatmul.mubr.f32.gmra.mrb[6].mxu0 %v2091_v0  ;;  %v1939_v0 = vpack.c.bf16 %v729_v63, %v728_v62 }
 0x2bd   :  { %1926 = vmatpush3.bf16.msra.mxu0 %v1923_v52  ;;  %v1975_v52 = vpack.c.bf16 %v863_v51, %v862_v50 }
 0x2be   :  { %1928 = vmatprep.subr.bf16.mxu0 %v1927_v55 }
 0x2c1   :  { %1930 = vmatpush3.bf16.msra.mxu0 %v1927_v55  ;;  %v1979_v55 = vpack.c.bf16 %v865_v54, %v864_v53 }
 0x2c2   :  { %1932 = vmatprep.subr.bf16.mxu0 %v1931_v58 }
 0x2c5   :  { %1934 = vmatpush3.bf16.msra.mxu0 %v1931_v58  ;;  %v1983_v58 = vpack.c.bf16 %v983_v57, %v982_v56 }
 0x2c6   :  { %1936 = vmatprep.subr.bf16.mxu0 %v1935_v61 }
 0x2c9   :  { %1938 = vmatpush3.bf16.msra.mxu0 %v1935_v61 }
 0x2ca   :  { %1940 = vmatprep.subr.bf16.mxu0 %v1939_v0 }
 0x2cd   :  { %1942 = vmatpush3.bf16.msra.mxu0 %v1939_v0 }
 0x2ce   :  { %1944 = vmatprep.subr.bf16.mxu0 %v1943_v3 }
 0x2d1   :  { %1946 = vmatpush3.bf16.msra.mxu0 %v1943_v3 }
 0x2d2   :  { %1948 = vmatprep.subr.bf16.mxu0 %v1947_v6 }
 0x2d5   :  { %1950 = vmatpush3.bf16.msra.mxu0 %v1947_v6 }
 0x2d6   :  { %1984 = vmatprep.subr.bf16.mxu0 %v1983_v58 }
 0x38b   :  { %v1597_v26 = vpop.f32.mrb[4].mxu0 }
 0x38c   :  { %v545_v27 = vadd.f32 %v1597_v26, %v1297_v25  ;;  %v539_v28 = vpop.f32.mrb[5].mxu0 }
 0x38d   :  { %v540_v29 = vadd.f32 %v1297_v25, %v539_v28 }
 0x38e   :  { %v1299_v30 = vmul.f32 -1.442695, %v545_v27 }
 0x38f   :  { %v1298_v31 = vmul.f32 -1.442695, %v540_v29  ;;  %v1600_v32 = vpop.f32.mrb[6].mxu0 }
 0x390   :  { %2092 = vpow2.f32 %v1299_v30  ;;  %v555_v33 = vadd.f32 %v1600_v32, %v1297_v25  ;;  %v549_v34 = vpop.f32.mrb[7].mxu0 }
 0x391   :  { %2094 = vpow2.f32 %v1298_v31  ;;  %v550_v35 = vadd.f32 %v1297_v25, %v549_v34 }
 0x392   :  { %v1301_v36 = vmul.f32 -1.442695, %v555_v33 }
 0x393   :  { %v1300_v37 = vmul.f32 -1.442695, %v550_v35  ;;  %v852_v35 = vld [vmem:[#allocation13 + $0x10] sm:$0xff] }
 0x394   :  { %2096 = vpow2.f32 %v1301_v36  ;;  %v853_v36 = vld [vmem:[#allocation13 + $0x18] sm:$0xff] }
 0x395   :  { %2098 = vpow2.f32 %v1300_v37  ;;  %v1955_v37 = vpack.c.bf16 %v853_v36, %v852_v35  ;;  %v994_v35 = vld [vmem:[#allocation14 + $0x60] sm:$0xff]  ;;  %v995_v36 = vld [vmem:[#allocation14 + $0x68] sm:$0xff] }
 0x39a   :  { %v2093_v38 = vpop.eup %2092 }
 0x39b   :  { %v2095_v39 = vpop.eup %2094  ;;  %v571_v40 = vadd.f32 1.0, %v2093_v38  ;;  %v854_v38 = vld [vmem:[#allocation13 + $0x20] sm:$0xff] }
 0x39c   :  { %v570_v41 = vadd.f32 1.0, %v2095_v39  ;;  %v855_v39 = vld [vmem:[#allocation13 + $0x28] sm:$0xff] }
 0x39e   :  { %v2097_v42 = vpop.eup %2096  ;;  %2100 = vrcp.f32 %v570_v41  ;;  %v856_v41 = vld [vmem:[#allocation13 + $0x30] sm:$0xff] }
 0x39f   :  { %v2099_v43 = vpop.eup %2098  ;;  %2102 = vrcp.f32 %v571_v40  ;;  %v573_v44 = vadd.f32 1.0, %v2097_v42  ;;  %v1959_v40 = vpack.c.bf16 %v855_v39, %v854_v38  ;;  %v857_v42 = vld [vmem:[#allocation13 + $0x38] sm:$0xff]  ;;  %v996_v38 = vld [vmem:[#allocation14 + $0x70] sm:$0xff] }
 0x3a0   :  { %v572_v45 = vadd.f32 1.0, %v2099_v43  ;;  %v1963_v43 = vpack.c.bf16 %v857_v42, %v856_v41  ;;  %v997_v39 = vld [vmem:[#allocation14 + $0x78] sm:$0xff]  ;;  %v1114_v41 = vld [vmem:[#allocation16] sm:$0xff]  ;;  %v1115_v42 = vld [vmem:[#allocation16 + $0x8] sm:$0xff] }
 0x3a2   :  { %2104 = vrcp.f32 %v572_v45  ;;  %v859_v45 = vld [vmem:[#allocation13 + $0x48] sm:$0xff] }
 0x3a3   :  { %2106 = vrcp.f32 %v573_v44  ;;  %v858_v44 = vld [vmem:[#allocation13 + $0x40] sm:$0xff] }
 0x3a8   :  { %v2101_v46 = vpop.eup %2100 }
 0x3a9   :  { %v2103_v47 = vpop.eup %2102  ;;  %1633 = vmatprep.mubr.f32.mxu1 %v2101_v46  ;;  %v1967_v46 = vpack.c.bf16 %v859_v45, %v858_v44  ;;  %v1312_v44 = vld [vmem:[%s2781_s12] ss:$0 sm:$0xff] }
 0x3aa   :  { %1634 = vmatmul.mubr.f32.vlgmr.msra.gmra.mrb[4].mxu1 %v2103_v47  ;;  %v860_v47 = vld [vmem:[#allocation13 + $0x50] sm:$0xff] }
 0x3ab   :  { %1954 = vmatpush3.bf16.msra.mxu1 %v1951_v9 }
 0x3ac   :  { %v2105_v48 = vpop.eup %2104  ;;  %1956 = vmatprep.subr.bf16.mxu1 %v1955_v37 }
 0x3ad   :  { %v2107_v49 = vpop.eup %2106  ;;  %1636 = vmatprep.mubr.f32.mxu1 %v2105_v48  ;;  %v861_v48 = vld [vmem:[#allocation13 + $0x58] sm:$0xff] }
 0x3ae   :  { %1637 = vmatmul.mubr.f32.gmra.mrb[6].mxu1 %v2107_v49  ;;  %v1971_v49 = vpack.c.bf16 %v861_v48, %v860_v47 }
 0x3af   :  { %1958 = vmatpush3.bf16.msra.mxu1 %v1955_v37  ;;  %v2007_v37 = vpack.c.bf16 %v995_v36, %v994_v35 }
 0x3b0   :  { %1960 = vmatprep.subr.bf16.mxu1 %v1959_v40 }
 0x3b3   :  { %1962 = vmatpush3.bf16.msra.mxu1 %v1959_v40  ;;  %v2011_v40 = vpack.c.bf16 %v997_v39, %v996_v38 }
 0x3b4   :  { %1964 = vmatprep.subr.bf16.mxu1 %v1963_v43 }
 0x3b7   :  { %1966 = vmatpush3.bf16.msra.mxu1 %v1963_v43  ;;  %v2015_v43 = vpack.c.bf16 %v1115_v42, %v1114_v41 }
 0x3b8   :  { %1968 = vmatprep.subr.bf16.mxu1 %v1967_v46 }
 0x3bb   :  { %1970 = vmatpush3.bf16.msra.mxu1 %v1967_v46 }
 0x3bc   :  { %1972 = vmatprep.subr.bf16.mxu1 %v1971_v49 }
 0x3bf   :  { %1974 = vmatpush3.bf16.msra.mxu1 %v1971_v49 }
 0x3c0   :  { %1976 = vmatprep.subr.bf16.mxu1 %v1975_v52 }
 0x3c3   :  { %1978 = vmatpush3.bf16.msra.mxu1 %v1975_v52 }
 0x3c4   :  { %1980 = vmatprep.subr.bf16.mxu1 %v1979_v55 }
 0x3c7   :  { %1982 = vmatpush3.bf16.msra.mxu1 %v1979_v55 }
 0x3c8   :  { %2016 = vmatprep.subr.bf16.mxu1 %v2015_v43 }
 0x47d   :  { %v1635_v11 = vpop.f32.mrb[4].mxu1 }
 0x47e   :  { %v677_v12 = vadd.f32 %v1635_v11, %v1302_v10  ;;  %v671_v13 = vpop.f32.mrb[5].mxu1 }
 0x47f   :  { %v672_v14 = vadd.f32 %v1302_v10, %v671_v13 }
 0x480   :  { %v1304_v15 = vmul.f32 -1.442695, %v677_v12 }
 0x481   :  { %v1303_v16 = vmul.f32 -1.442695, %v672_v14  ;;  %v1638_v17 = vpop.f32.mrb[6].mxu1 }
 0x482   :  { %2108 = vpow2.f32 %v1304_v15  ;;  %v687_v18 = vadd.f32 %v1638_v17, %v1302_v10  ;;  %v681_v19 = vpop.f32.mrb[7].mxu1 }
 0x483   :  { %2110 = vpow2.f32 %v1303_v16  ;;  %v682_v20 = vadd.f32 %v1302_v10, %v681_v19 }
 0x484   :  { %v1306_v21 = vmul.f32 -1.442695, %v687_v18 }
 0x485   :  { %v1305_v22 = vmul.f32 -1.442695, %v682_v20  ;;  %v984_v20 = vld [vmem:[#allocation14 + $0x10] sm:$0xff] }
 0x486   :  { %2112 = vpow2.f32 %v1306_v21  ;;  %v985_v21 = vld [vmem:[#allocation14 + $0x18] sm:$0xff] }
 0x487   :  { %2114 = vpow2.f32 %v1305_v22  ;;  %v1987_v22 = vpack.c.bf16 %v985_v21, %v984_v20  ;;  %v1126_v20 = vld [vmem:[#allocation16 + $0x60] sm:$0xff]  ;;  %v1127_v21 = vld [vmem:[#allocation16 + $0x68] sm:$0xff] }
 0x48c   :  { %v2109_v23 = vpop.eup %2108 }
 0x48d   :  { %v2111_v24 = vpop.eup %2110  ;;  %v703_v25 = vadd.f32 1.0, %v2109_v23  ;;  %v986_v23 = vld [vmem:[#allocation14 + $0x20] sm:$0xff] }
 0x48e   :  { %v702_v26 = vadd.f32 1.0, %v2111_v24  ;;  %v987_v24 = vld [vmem:[#allocation14 + $0x28] sm:$0xff] }
 0x48f   :  { %2116 = vrcp.f32 %v703_v25  ;;  %v1991_v25 = vpack.c.bf16 %v987_v24, %v986_v23  ;;  %v1128_v23 = vld [vmem:[#allocation16 + $0x70] sm:$0xff]  ;;  %v1129_v24 = vld [vmem:[#allocation16 + $0x78] sm:$0xff] }
 0x490   :  { %v2113_v27 = vpop.eup %2112  ;;  %2118 = vrcp.f32 %v702_v26  ;;  %v988_v26 = vld [vmem:[#allocation14 + $0x30] sm:$0xff] }
 0x491   :  { %v2115_v28 = vpop.eup %2114  ;;  %v705_v29 = vadd.f32 1.0, %v2113_v27  ;;  %v989_v27 = vld [vmem:[#allocation14 + $0x38] sm:$0xff] }
 0x492   :  { %v704_v30 = vadd.f32 1.0, %v2115_v28  ;;  %v1995_v28 = vpack.c.bf16 %v989_v27, %v988_v26  ;;  %v1317_v26 = vld [vmem:[%s2783_s14] ss:$0 sm:$0xff]  ;;  %s2455_s14 = smov [#allocation17]  }
 0x493   :  { %2120 = vrcp.f32 %v705_v29  ;;  %v990_v29 = vld [vmem:[#allocation14 + $0x40] sm:$0xff]  ;;  %s1255_s29 = sshll.u32 %s2455_s14, 4  ;;  %s1256_s29 = int_to_ptr.vmem [resolvable:$true] %s1255_s29 }
 0x494   :  { %2122 = vrcp.f32 %v704_v30  ;;  %v991_v30 = vld [vmem:[#allocation14 + $0x48] sm:$0xff]  ;;  %s2386_s23 = scalar_lea.vmem %s1256_s29, 512  ;;  %p2391_p3 = scmp.lt.s32.totalorder %s1256_s29, %s1256_s29 }
 0x495   :  { %p2387_p2 = scmp.ne.s32.totalorder %s1256_s29, %s2386_s23  ;;  %p2392_p4 = scmp.lt.s32.totalorder %s2386_s23, %s2386_s23 }
 0x497   :  { %p2393_p5 = por %p2392_p4, %p2391_p3 }
 0x499   :  { %v2117_v31 = vpop.eup %2116  ;;  %p2394_p6 = pnand %p2393_p5, %p2387_p2 }
 0x49a   :  { %v2119_v32 = vpop.eup %2118  ;;  %715 = vst [vmem:[#allocation17 + $0x8] sm:$0xff] %v2117_v31 }
 0x49b   :  { %714 = vst [vmem:[#allocation17] sm:$0xff] %v2119_v32  ;;  %1671 = vmatprep.mubr.f32.mxu0 %v2119_v32  ;;  %v992_v32 = vld [vmem:[#allocation14 + $0x50] sm:$0xff] }
 0x49c   :  { %1672 = vmatmul.mubr.f32.vlgmr.msra.gmra.mrb[8].mxu0 %v2117_v31  ;;  %v1999_v31 = vpack.c.bf16 %v991_v30, %v990_v29 }
 0x49d   :  { %v2121_v33 = vpop.eup %2120  ;;  %1986 = vmatpush3.bf16.msra.mxu0 %v1983_v58 }
 0x49e   :  { %v2123_v34 = vpop.eup %2122  ;;  %717 = vst [vmem:[#allocation17 + $0x18] sm:$0xff] %v2121_v33  ;;  %1988 = vmatprep.subr.bf16.mxu0 %v1987_v22 }
 0x49f   :  { %716 = vst [vmem:[#allocation17 + $0x10] sm:$0xff] %v2123_v34  ;;  %1674 = vmatprep.mubr.f32.mxu0 %v2123_v34 }
 0x4a0   :  { %1675 = vmatmul.mubr.f32.gmra.mrb[10].mxu0 %v2121_v33  ;;  %v993_v33 = vld [vmem:[#allocation14 + $0x58] sm:$0xff] }
 0x4a1   :  { %1990 = vmatpush3.bf16.msra.mxu0 %v1987_v22  ;;  %v2003_v34 = vpack.c.bf16 %v993_v33, %v992_v32  ;;  %v2039_v22 = vpack.c.bf16 %v1127_v21, %v1126_v20 }
 0x4a2   :  { %1992 = vmatprep.subr.bf16.mxu0 %v1991_v25 }
 0x4a5   :  { %1994 = vmatpush3.bf16.msra.mxu0 %v1991_v25  ;;  %v2043_v25 = vpack.c.bf16 %v1129_v24, %v1128_v23 }
 0x4a6   :  { %1996 = vmatprep.subr.bf16.mxu0 %v1995_v28 }
 0x4a9   :  { %1998 = vmatpush3.bf16.msra.mxu0 %v1995_v28 }
 0x4aa   :  { %2000 = vmatprep.subr.bf16.mxu0 %v1999_v31 }
 0x4ad   :  { %2002 = vmatpush3.bf16.msra.mxu0 %v1999_v31 }
 0x4ae   :  { %2004 = vmatprep.subr.bf16.mxu0 %v2003_v34 }
 0x4b1   :  { %2006 = vmatpush3.bf16.msra.mxu0 %v2003_v34 }
 0x4b2   :  { %2008 = vmatprep.subr.bf16.mxu0 %v2007_v37 }
 0x4b5   :  { %2010 = vmatpush3.bf16.msra.mxu0 %v2007_v37 }
 0x4b6   :  { %2012 = vmatprep.subr.bf16.mxu0 %v2011_v40 }
 0x4b9   :  { %2014 = vmatpush3.bf16.msra.mxu0 %v2011_v40 }
 0x56f   :  { %v1673_v60 = vpop.f32.mrb[8].mxu0 }
 0x570   :  { %v813_v61 = vadd.f32 %v1673_v60, %v1307_v59  ;;  %v807_v62 = vpop.f32.mrb[9].mxu0 }
 0x571   :  { %v808_v63 = vadd.f32 %v1307_v59, %v807_v62 }
 0x572   :  { %v1309_v0 = vmul.f32 -1.442695, %v813_v61 }
 0x573   :  { %v1308_v1 = vmul.f32 -1.442695, %v808_v63  ;;  %v1676_v2 = vpop.f32.mrb[10].mxu0 }
 0x574   :  { %2124 = vpow2.f32 %v1309_v0  ;;  %v823_v3 = vadd.f32 %v1676_v2, %v1307_v59  ;;  %v817_v4 = vpop.f32.mrb[11].mxu0 }
 0x575   :  { %2126 = vpow2.f32 %v1308_v1  ;;  %v818_v5 = vadd.f32 %v1307_v59, %v817_v4 }
 0x576   :  { %v1311_v6 = vmul.f32 -1.442695, %v823_v3 }
 0x577   :  { %v1310_v7 = vmul.f32 -1.442695, %v818_v5  ;;  %v1116_v5 = vld [vmem:[#allocation16 + $0x10] sm:$0xff] }
 0x578   :  { %2128 = vpow2.f32 %v1311_v6  ;;  %v1117_v6 = vld [vmem:[#allocation16 + $0x18] sm:$0xff] }
 0x579   :  { %2130 = vpow2.f32 %v1310_v7  ;;  %v2019_v7 = vpack.c.bf16 %v1117_v6, %v1116_v5 }
 0x57e   :  { %v2125_v8 = vpop.eup %2124 }
 0x57f   :  { %v2127_v9 = vpop.eup %2126  ;;  %v839_v10 = vadd.f32 1.0, %v2125_v8  ;;  %v1118_v8 = vld [vmem:[#allocation16 + $0x20] sm:$0xff] }
 0x580   :  { %v838_v11 = vadd.f32 1.0, %v2127_v9  ;;  %v1119_v9 = vld [vmem:[#allocation16 + $0x28] sm:$0xff] }
 0x582   :  { %v2129_v12 = vpop.eup %2128  ;;  %2132 = vrcp.f32 %v838_v11  ;;  %v1120_v11 = vld [vmem:[#allocation16 + $0x30] sm:$0xff] }
 0x583   :  { %v2131_v13 = vpop.eup %2130  ;;  %2134 = vrcp.f32 %v839_v10  ;;  %v841_v14 = vadd.f32 1.0, %v2129_v12  ;;  %v2023_v10 = vpack.c.bf16 %v1119_v9, %v1118_v8  ;;  %v1121_v12 = vld [vmem:[#allocation16 + $0x38] sm:$0xff] }
 0x584   :  { %v840_v15 = vadd.f32 1.0, %v2131_v13  ;;  %v2027_v13 = vpack.c.bf16 %v1121_v12, %v1120_v11 }
 0x586   :  { %2136 = vrcp.f32 %v840_v15  ;;  %v1123_v15 = vld [vmem:[#allocation16 + $0x48] sm:$0xff] }
 0x587   :  { %2138 = vrcp.f32 %v841_v14  ;;  %v1122_v14 = vld [vmem:[#allocation16 + $0x40] sm:$0xff] }
 0x58c   :  { %v2133_v16 = vpop.eup %2132 }
 0x58d   :  { %v2135_v17 = vpop.eup %2134  ;;  %1709 = vmatprep.mubr.f32.mxu1 %v2133_v16  ;;  %v2031_v16 = vpack.c.bf16 %v1123_v15, %v1122_v14 }
 0x58e   :  { %1710 = vmatmul.mubr.f32.vlgmr.msra.gmra.mrb[8].mxu1 %v2135_v17  ;;  %v1124_v17 = vld [vmem:[#allocation16 + $0x50] sm:$0xff] }
 0x58f   :  { %2018 = vmatpush3.bf16.msra.mxu1 %v2015_v43 }
 0x590   :  { %v2137_v18 = vpop.eup %2136  ;;  %2020 = vmatprep.subr.bf16.mxu1 %v2019_v7 }
 0x591   :  { %v2139_v19 = vpop.eup %2138  ;;  %1712 = vmatprep.mubr.f32.mxu1 %v2137_v18  ;;  %v1125_v18 = vld [vmem:[#allocation16 + $0x58] sm:$0xff] }
 0x592   :  { %1713 = vmatmul.mubr.f32.gmra.mrb[10].mxu1 %v2139_v19  ;;  %v2035_v19 = vpack.c.bf16 %v1125_v18, %v1124_v17 }
 0x593   :  { %2022 = vmatpush3.bf16.msra.mxu1 %v2019_v7 }
 0x594   :  { %2024 = vmatprep.subr.bf16.mxu1 %v2023_v10 }
 0x597   :  { %2026 = vmatpush3.bf16.msra.mxu1 %v2023_v10 }
 0x598   :  { %2028 = vmatprep.subr.bf16.mxu1 %v2027_v13 }
 0x59b   :  { %2030 = vmatpush3.bf16.msra.mxu1 %v2027_v13 }
 0x59c   :  { %2032 = vmatprep.subr.bf16.mxu1 %v2031_v16 }
 0x59f   :  { %2034 = vmatpush3.bf16.msra.mxu1 %v2031_v16 }
 0x5a0   :  { %2036 = vmatprep.subr.bf16.mxu1 %v2035_v19 }
 0x5a3   :  { %2038 = vmatpush3.bf16.msra.mxu1 %v2035_v19 }
 0x5a4   :  { %2040 = vmatprep.subr.bf16.mxu1 %v2039_v22 }
 0x5a7   :  { %2042 = vmatpush3.bf16.msra.mxu1 %v2039_v22 }
 0x5a8   :  { %2044 = vmatprep.subr.bf16.mxu1 %v2043_v25 }
 0x5ab   :  { %2046 = vmatpush3.bf16.msra.mxu1 %v2043_v25 }
 0x661   :  { %v1711_v45 = vpop.f32.mrb[8].mxu1 }
 0x662   :  { %v945_v46 = vadd.f32 %v1711_v45, %v1312_v44  ;;  %v939_v47 = vpop.f32.mrb[9].mxu1 }
 0x663   :  { %v940_v48 = vadd.f32 %v1312_v44, %v939_v47 }
 0x664   :  { %v1314_v49 = vmul.f32 -1.442695, %v945_v46 }
 0x665   :  { %v1313_v50 = vmul.f32 -1.442695, %v940_v48  ;;  %v1714_v51 = vpop.f32.mrb[10].mxu1 }
 0x666   :  { %2140 = vpow2.f32 %v1314_v49  ;;  %v955_v52 = vadd.f32 %v1714_v51, %v1312_v44  ;;  %v949_v53 = vpop.f32.mrb[11].mxu1 }
 0x667   :  { %2142 = vpow2.f32 %v1313_v50  ;;  %v950_v54 = vadd.f32 %v1312_v44, %v949_v53 }
 0x668   :  { %v1316_v55 = vmul.f32 -1.442695, %v955_v52 }
 0x669   :  { %v1315_v56 = vmul.f32 -1.442695, %v950_v54 }
 0x66a   :  { %2144 = vpow2.f32 %v1316_v55 }
 0x66b   :  { %2146 = vpow2.f32 %v1315_v56 }
 0x670   :  { %v2141_v57 = vpop.eup %2140 }
 0x671   :  { %v2143_v58 = vpop.eup %2142  ;;  %v971_v59 = vadd.f32 1.0, %v2141_v57 }
 0x672   :  { %v970_v60 = vadd.f32 1.0, %v2143_v58 }
 0x674   :  { %v2145_v61 = vpop.eup %2144  ;;  %2148 = vrcp.f32 %v970_v60 }
 0x675   :  { %v2147_v62 = vpop.eup %2146  ;;  %2150 = vrcp.f32 %v971_v59  ;;  %v973_v63 = vadd.f32 1.0, %v2145_v61 }
 0x676   :  { %v972_v0 = vadd.f32 1.0, %v2147_v62 }
 0x678   :  { %2152 = vrcp.f32 %v972_v0 }
 0x679   :  { %2154 = vrcp.f32 %v973_v63 }
 0x67e   :  { %v2149_v1 = vpop.eup %2148 }
 0x67f   :  { %v2151_v2 = vpop.eup %2150  ;;  %1747 = vmatprep.mubr.f32.mxu0 %v2149_v1 }
 0x680   :  { %1748 = vmatmul.mubr.f32.vlgmr.msra.gmra.mrb[12].mxu0 %v2151_v2 }
 0x682   :  { %v2153_v3 = vpop.eup %2152 }
 0x683   :  { %v2155_v4 = vpop.eup %2154  ;;  %1750 = vmatprep.mubr.f32.mxu0 %v2153_v3 }
 0x684   :  { %1751 = vmatmul.mubr.f32.gmra.mrb[14].mxu0 %v2155_v4 }
 0x753   :  { %v1749_v27 = vpop.f32.mrb[12].mxu0 }
 0x754   :  { %v1077_v28 = vadd.f32 %v1749_v27, %v1317_v26  ;;  %v1071_v29 = vpop.f32.mrb[13].mxu0 }
 0x755   :  { %v1072_v30 = vadd.f32 %v1317_v26, %v1071_v29 }
 0x756   :  { %v1319_v31 = vmul.f32 -1.442695, %v1077_v28 }
 0x757   :  { %v1318_v32 = vmul.f32 -1.442695, %v1072_v30  ;;  %v1752_v33 = vpop.f32.mrb[14].mxu0 }
 0x758   :  { %2156 = vpow2.f32 %v1319_v31  ;;  %v1087_v34 = vadd.f32 %v1752_v33, %v1317_v26  ;;  %v1081_v35 = vpop.f32.mrb[15].mxu0 }
 0x759   :  { %2158 = vpow2.f32 %v1318_v32  ;;  %v1082_v36 = vadd.f32 %v1317_v26, %v1081_v35 }
 0x75a   :  { %v1321_v37 = vmul.f32 -1.442695, %v1087_v34 }
 0x75b   :  { %v1320_v38 = vmul.f32 -1.442695, %v1082_v36 }
 0x75c   :  { %2160 = vpow2.f32 %v1321_v37 }
 0x75d   :  { %2162 = vpow2.f32 %v1320_v38 }
 0x762   :  { %v2157_v39 = vpop.eup %2156 }
 0x763   :  { %v2159_v40 = vpop.eup %2158  ;;  %v1103_v41 = vadd.f32 1.0, %v2157_v39 }
 0x764   :  { %v1102_v42 = vadd.f32 1.0, %v2159_v40 }
 0x766   :  { %v2161_v43 = vpop.eup %2160  ;;  %2164 = vrcp.f32 %v1102_v42 }
 0x767   :  { %v2163_v44 = vpop.eup %2162  ;;  %2166 = vrcp.f32 %v1103_v41  ;;  %v1105_v45 = vadd.f32 1.0, %v2161_v43 }
 0x768   :  { %v1104_v46 = vadd.f32 1.0, %v2163_v44 }
 0x76a   :  { %2168 = vrcp.f32 %v1104_v46 }
 0x76b   :  { %2170 = vrcp.f32 %v1105_v45 }
 0x770   :  { %v2165_v47 = vpop.eup %2164 }
 0x771   :  { %v2167_v48 = vpop.eup %2166  ;;  %1785 = vmatprep.mubr.f32.mxu1 %v2165_v47 }
 0x772   :  { %1786 = vmatmul.mubr.f32.vlgmr.msra.gmra.mrb[12].mxu1 %v2167_v48 }
 0x774   :  { %v2169_v49 = vpop.eup %2168 }
 0x775   :  { %v2171_v50 = vpop.eup %2170  ;;  %1788 = vmatprep.mubr.f32.mxu1 %v2169_v49 }
 0x776   :  { %1789 = vmatmul.mubr.f32.gmra.mrb[14].mxu1 %v2171_v50 }
 0x777   :  { %2397 = shalt.err (!%p2394_p6)
}
 0x778   :  { %s2398_s3 = scalar_lea.hbm %s2786_s17, 512 }
 0x779   :  { %p2399_p7 = scmp.ne.s32.totalorder %s2786_s17, %s2398_s3  ;;  %p2402_p8 = scmp.lt.u32.totalorder %s2398_s3, %s2786_s17 }
 0x77b   :  { %p2404_p9 = pnand %p2402_p8, %p2399_p7 }
 0x77d   :  { %2407 = shalt.err (!%p2404_p9)
}
 0x77e   :  { %1261 = dma.vmem_to_hbm [thread:$0]  %s1256_s29, 512, %s2786_s17, [#allocation4], %s2446_s25, %s2446_s25, %s2447_s26  }
 0x77f   :  { %v1322_v51 = vld [vmem:[%s2785_s16] ss:$0 sm:$0xff]  ;;  %s2456_s16 = smov [#allocation18]  }
 0x780   :  { %s1267_s17 = sshll.u32 %s2456_s16, 4  ;;  %s1268_s17 = int_to_ptr.vmem [resolvable:$true] %s1267_s17 }
 0x781   :  { %s2408_s27 = scalar_lea.vmem %s1268_s17, 512  ;;  %p2413_p11 = scmp.lt.s32.totalorder %s1268_s17, %s1268_s17 }
 0x782   :  { %p2409_p10 = scmp.ne.s32.totalorder %s1268_s17, %s2408_s27  ;;  %p2414_p12 = scmp.lt.s32.totalorder %s2408_s27, %s2408_s27 }
 0x784   :  { %p2415_p13 = por %p2414_p12, %p2413_p11 }
 0x786   :  { %p2416_p0 = pnand %p2415_p13, %p2409_p10 }
 0x845   :  { %v1787_v52 = vpop.f32.mrb[12].mxu1 }
 0x846   :  { %v1209_v53 = vadd.f32 %v1787_v52, %v1322_v51  ;;  %v1203_v54 = vpop.f32.mrb[13].mxu1 }
 0x847   :  { %v1204_v55 = vadd.f32 %v1322_v51, %v1203_v54 }
 0x848   :  { %v1324_v56 = vmul.f32 -1.442695, %v1209_v53 }
 0x849   :  { %v1323_v57 = vmul.f32 -1.442695, %v1204_v55  ;;  %v1790_v58 = vpop.f32.mrb[14].mxu1 }
 0x84a   :  { %2172 = vpow2.f32 %v1324_v56  ;;  %v1219_v59 = vadd.f32 %v1790_v58, %v1322_v51  ;;  %v1213_v60 = vpop.f32.mrb[15].mxu1 }
 0x84b   :  { %2174 = vpow2.f32 %v1323_v57  ;;  %v1214_v61 = vadd.f32 %v1322_v51, %v1213_v60 }
 0x84c   :  { %v1326_v62 = vmul.f32 -1.442695, %v1219_v59 }
 0x84d   :  { %v1325_v63 = vmul.f32 -1.442695, %v1214_v61 }
 0x84e   :  { %2176 = vpow2.f32 %v1326_v62 }
 0x84f   :  { %2178 = vpow2.f32 %v1325_v63 }
 0x854   :  { %v2173_v0 = vpop.eup %2172 }
 0x855   :  { %v2175_v1 = vpop.eup %2174  ;;  %v1235_v2 = vadd.f32 1.0, %v2173_v0 }
 0x856   :  { %v1234_v3 = vadd.f32 1.0, %v2175_v1 }
 0x857   :  { %2180 = vrcp.f32 %v1235_v2 }
 0x858   :  { %v2177_v4 = vpop.eup %2176  ;;  %2182 = vrcp.f32 %v1234_v3 }
 0x859   :  { %v2179_v5 = vpop.eup %2178  ;;  %v1237_v6 = vadd.f32 1.0, %v2177_v4 }
 0x85a   :  { %v1236_v7 = vadd.f32 1.0, %v2179_v5 }
 0x85b   :  { %2184 = vrcp.f32 %v1237_v6 }
 0x85c   :  { %2186 = vrcp.f32 %v1236_v7 }
 0x861   :  { %v2181_v8 = vpop.eup %2180 }
 0x862   :  { %v2183_v9 = vpop.eup %2182  ;;  %1247 = vst [vmem:[#allocation18 + $0x8] sm:$0xff] %v2181_v8 }
 0x863   :  { %1246 = vst [vmem:[#allocation18] sm:$0xff] %v2183_v9 }
 0x865   :  { %v2185_v10 = vpop.eup %2184 }
 0x866   :  { %v2187_v11 = vpop.eup %2186  ;;  %1249 = vst [vmem:[#allocation18 + $0x18] sm:$0xff] %v2185_v10 }
 0x867   :  { %1248 = vst [vmem:[#allocation18 + $0x10] sm:$0xff] %v2187_v11 }
 0x868   :  { %2419 = shalt.err (!%p2416_p0)
}
 0x869   :  { %s2798_s4 = sld [smem:[#allocation30_spill]] }
 0x86f   :  { %s2420_s19 = scalar_lea.hbm %s2798_s4, 512 }
 0x870   :  { %p2421_p1 = scmp.ne.s32.totalorder %s2798_s4, %s2420_s19  ;;  %p2424_p2 = scmp.lt.u32.totalorder %s2420_s19, %s2798_s4 }
 0x872   :  { %p2426_p3 = pnand %p2424_p2, %p2421_p1 }
 0x874   :  { %2429 = shalt.err (!%p2426_p3)
}
 0x875   :  { %1273 = dma.vmem_to_hbm [thread:$0]  %s1268_s17, 512, %s2798_s4, [#allocation19], %s2446_s25, %s2446_s25, %s2447_s26  }
 0x876   :  { %2440 = dma.done.wait [#allocation4], 512  }
 0x877   :  { %2441 = vsyncadd [#allocation4], 4294966784 }
 0x878   :  { %2442 = dma.done.wait [#allocation19], 512  }
 0x879   :  { %2443 = vsyncadd [#allocation19], 4294966784 }
 0x87a   :  { %1280 = vsyncpa [#allocation3], 1 }
 0x87b   :  { %1281 = vsyncpa [#allocation6], 1 }
 0x87c   :  { %1282 = vsyncpa [#allocation9], 1 }
 0x87d   :  { %1283 = vsyncpa [#allocation12], 1 }
 0x87e   :  { %1284 = vsyncpa [#allocation15], 1 }
 0x87f   :  { %1285 = vsyncpa [#allocation4], 1 }
 0x880   :  { %1286 = vsyncpa [#allocation19], 1 }

</bundles_post_ra>
